<compile_context>
chip_gen: v7x
topology: tpu7x:2x2x1
jax: 0.10.0
libtpu: 0.0.40
codegen_flags: <defaults>
</compile_context>

<pallas_src>
import jax
import jax.numpy as jnp
from jax.experimental import pallas as pl
from jax.experimental.pallas import tpu as pltpu

BN_EPS = 1e-5
LANE = 128


# ----------------------------------------------------------------------------- kernel

def batch_net_kernel(x_ref, w1_ref, b1_ref, w2_ref, b2_ref, w3_ref, b3_ref, o_ref):
    # layer1: (folded) Linear -> ReLU.  Cast of x rides in VPU slack under the DMAs.
    x = x_ref[...].astype(w1_ref.dtype)
    h = jnp.dot(x, w1_ref[...], preferred_element_type=jnp.float32)
    h = jnp.maximum(h + b1_ref[...], 0.0)           # f32 epilogue (v5e-friendly)

    # layer2: (folded) Linear -> ReLU
    h = jnp.dot(h.astype(w2_ref.dtype), w2_ref[...], preferred_element_type=jnp.float32)
    h = jnp.maximum(h + b2_ref[...], 0.0)

    # layer3: Linear
    out = jnp.dot(h.astype(w3_ref.dtype), w3_ref[...], preferred_element_type=jnp.float32)
    o_ref[...] = (out + b3_ref[...]).astype(o_ref.dtype)


# --------------------------------------------------------------------------- wrappers

def _round_up(n, m):
    return ((n + m - 1) // m) * m


def _pad_to(a, shape):
    return jnp.pad(a, [(0, s - d) for d, s in zip(a.shape, shape)])


def pack_params(params, *, dtype=jnp.bfloat16):
    """Fold eval-mode BN into the Linear weights; pad hidden/output dims to 128 lanes.

    The input (K) dim of w1 is intentionally left unpadded so x can be passed to the
    kernel without a host-side pad/cast.  Biases stay f32 (added in the f32 epilogue).
    """
    s1 = params["g1"] * jax.lax.rsqrt(params["v1"] + BN_EPS)          # (1, H1)
    w1 = params["w1"] * s1
    b1 = (params["b1"] - params["m1"]) * s1 + params["be1"]

    s2 = params["g2"] * jax.lax.rsqrt(params["v2"] + BN_EPS)          # (1, H2)
    w2 = params["w2"] * s2
    b2 = (params["b2"] - params["m2"]) * s2 + params["be2"]

    w3, b3 = params["w3"], params["b3"]

    in_dim, h1 = w1.shape
    h2 = w2.shape[1]
    out_dim = w3.shape[1]
    h1_p = _round_up(h1, LANE)
    h2_p = _round_up(h2, LANE)
    out_p = _round_up(out_dim, LANE)

    return dict(
        w1=_pad_to(w1, (in_dim, h1_p)).astype(dtype),
        b1=_pad_to(b1, (1, h1_p)).astype(jnp.float32),
        w2=_pad_to(w2, (h1_p, h2_p)).astype(dtype),
        b2=_pad_to(b2, (1, h2_p)).astype(jnp.float32),
        w3=_pad_to(w3, (h2_p, out_p)).astype(dtype),
        b3=_pad_to(b3, (1, out_p)).astype(jnp.float32),
        in_dim=in_dim, out_dim=out_dim,
    )


def _pick_batch_tile(B):
    """Largest tile (fewest serial steps on v5e/v6e) while keeping >= 2 grid steps
    when B > 128 so both v7x TensorCores get fed.  Capped at 512 rows."""
    if B <= 128:
        return _round_up(max(B, 8), 8)
    return min(512, _round_up(pl.cdiv(B, 2), 128))


def batch_net_forward(x, packed, *, batch_tile=None):
    """x: (B, in_dim) float32.  packed: output of pack_params."""
    w1, b1 = packed["w1"], packed["b1"]
    w2, b2 = packed["w2"], packed["b2"]
    w3, b3 = packed["w3"], packed["b3"]

    B, in_dim = x.shape
    assert in_dim == packed["in_dim"]
    _, h1_p = w1.shape
    h2_p, out_p = w3.shape

    if batch_tile is None:
        batch_tile = _pick_batch_tile(B)

    # Only the batch dim may need padding (features are passed at full extent, and the
    # dtype cast happens inside the kernel).
    Bp = _round_up(B, batch_tile)
    xk = x if Bp == B else jnp.pad(x, ((0, Bp - B), (0, 0)))

    w_itemsize = jnp.dtype(w1.dtype).itemsize
    flops = 2 * Bp * (in_dim * h1_p + h1_p * h2_p + h2_p * out_p)
    bytes_accessed = (
        xk.size * 4
        + (w1.size + w2.size + w3.size) * w_itemsize
        + (b1.size + b2.size + b3.size) * 4
        + Bp * out_p * 4
    )

    out = pl.pallas_call(
        batch_net_kernel,
        out_shape=jax.ShapeDtypeStruct((Bp, out_p), jnp.float32),
        grid_spec=pltpu.PrefetchScalarGridSpec(
            num_scalar_prefetch=0,
            grid=(Bp // batch_tile,),
            in_specs=[
                pl.BlockSpec((batch_tile, in_dim), lambda i: (i, 0)),  # x tile (f32, unpadded K)
                pl.BlockSpec((in_dim, h1_p), lambda i: (0, 0)),        # w1 (grid-resident)
                pl.BlockSpec((1, h1_p), lambda i: (0, 0)),             # b1
                pl.BlockSpec((h1_p, h2_p), lambda i: (0, 0)),          # w2
                pl.BlockSpec((1, h2_p), lambda i: (0, 0)),             # b2
                pl.BlockSpec((h2_p, out_p), lambda i: (0, 0)),         # w3
                pl.BlockSpec((1, out_p), lambda i: (0, 0)),            # b3
            ],
            out_specs=pl.BlockSpec((batch_tile, out_p), lambda i: (i, 0)),
        ),
        compiler_params=pltpu.CompilerParams(
            dimension_semantics=("parallel",),
        ),
        cost_estimate=pl.CostEstimate(
            flops=flops, transcendentals=0, bytes_accessed=bytes_accessed),
    )(xk, w1, b1, w2, b2, w3, b3)

    return out[:B, :packed["out_dim"]]


# ------------------------------------------------------------------ params & reference

def init_params(key, in_dim, n_hidden_1, n_hidden_2, out_dim):
    """Deterministic synthetic parameters matching Batch_Net's shapes.

    Linear weights are stored as (in_features, out_features) (i.e. W.T vs PyTorch).
    Biases / BN vectors are stored as (1, features).
    """
    ks = jax.random.split(key, 12)

    def lin(kw, kb, fan_in, fan_out):
        bound = 1.0 / jnp.sqrt(fan_in)
        w = jax.random.uniform(kw, (fan_in, fan_out), jnp.float32, -bound, bound)
        b = jax.random.uniform(kb, (1, fan_out), jnp.float32, -bound, bound)
        return w, b

    w1, b1 = lin(ks[0], ks[1], in_dim, n_hidden_1)
    w2, b2 = lin(ks[2], ks[3], n_hidden_1, n_hidden_2)
    w3, b3 = lin(ks[4], ks[5], n_hidden_2, out_dim)

    # BatchNorm1d (eval mode) with non-trivial deterministic stats.
    g1 = 1.0 + 0.1 * jax.random.normal(ks[6], (1, n_hidden_1), jnp.float32)
    be1 = 0.1 * jax.random.normal(ks[7], (1, n_hidden_1), jnp.float32)
    m1 = 0.1 * jax.random.normal(ks[8], (1, n_hidden_1), jnp.float32)
    v1 = 1.0 + 0.1 * jax.random.uniform(ks[9], (1, n_hidden_1), jnp.float32)

    g2 = 1.0 + 0.1 * jax.random.normal(ks[10], (1, n_hidden_2), jnp.float32)
    be2 = 0.1 * jax.random.normal(ks[11], (1, n_hidden_2), jnp.float32)
    m2 = jnp.zeros((1, n_hidden_2), jnp.float32)      # PyTorch default running_mean
    v2 = jnp.ones((1, n_hidden_2), jnp.float32)       # PyTorch default running_var

    return dict(
        w1=w1, b1=b1, g1=g1, be1=be1, m1=m1, v1=v1,
        w2=w2, b2=b2, g2=g2, be2=be2, m2=m2, v2=v2,
        w3=w3, b3=b3,
    )


def batch_net_ref(x, p):
    """Pure-JAX reference for the unfolded model (eval-mode BN)."""
    h = x @ p["w1"] + p["b1"]
    h = (h - p["m1"]) / jnp.sqrt(p["v1"] + BN_EPS) * p["g1"] + p["be1"]
    h = jnp.maximum(h, 0.0)
    h = h @ p["w2"] + p["b2"]
    h = (h - p["m2"]) / jnp.sqrt(p["v2"] + BN_EPS) * p["g2"] + p["be2"]
    h = jnp.maximum(h, 0.0)
    return h @ p["w3"] + p["b3"]


def batch_net_ref_packed(x, packed):
    """Pure-JAX reference using the *packed* (folded / padded / quantized) params."""
    dt = packed["w1"].dtype
    w1 = packed["w1"].astype(jnp.float32)
    w2 = packed["w2"].astype(jnp.float32)
    w3 = packed["w3"].astype(jnp.float32)
    h = x.astype(dt).astype(jnp.float32)
    h = jnp.maximum(h @ w1 + packed["b1"], 0.0).astype(dt).astype(jnp.float32)
    h = jnp.maximum(h @ w2 + packed["b2"], 0.0).astype(dt).astype(jnp.float32)
    return (h @ w3 + packed["b3"])[:, :packed["out_dim"]]


# --------------------------------------------------------------------------------- main

if __name__ == "__main__":
    # MNIST-like shapes (classic Batch_Net: 784 -> 300 -> 100 -> 10), batch 256 so the
    # grid has 2 parallel steps (keeps both v7x TensorCores busy; auto tile = 128).
    B, IN, H1, H2, OUT = 256, 784, 300, 100, 10

    key = jax.random.PRNGKey(0)
    kx, kp = jax.random.split(key)
    x = jax.random.normal(kx, (B, IN), jnp.float32)
    params = init_params(kp, IN, H1, H2, OUT)

    # --- default bf16 weight storage (MXU-native on v6e/v7x, also valid on v5e),
    #     checked against a reference using the same bf16-quantized params.
    packed_bf16 = pack_params(params)                       # dtype=jnp.bfloat16 default
    out_bf16 = jax.block_until_ready(batch_net_forward(x, packed_bf16))
    ref_bf16 = batch_net_ref_packed(x, packed_bf16)
    assert out_bf16.shape == (B, OUT)
    assert jnp.allclose(out_bf16, ref_bf16, atol=2e-2, rtol=2e-2), "bf16 mismatch vs reference"

    # --- f32 correctness baseline: folded/padded kernel vs the unfolded reference.
    packed_f32 = pack_params(params, dtype=jnp.float32)
    out_f32 = jax.block_until_ready(batch_net_forward(x, packed_f32))
    ref = batch_net_ref(x, params)
    assert out_f32.shape == (B, OUT)
    assert jnp.allclose(out_f32, ref, atol=1e-3, rtol=1e-3), "f32 mismatch vs reference"

    # TODO(synk): BatchNorm1d training-mode (batch statistics + running-stat update) is
    # not implemented; BN is folded in eval mode, matching module.eval() semantics.
    print("KERNEL_OK")
</pallas_src>

<mosaic_0001>
module attributes {stable_mosaic.version = 11 : i64} {
  func.func @batch_net_kernel(%arg0: i32, %arg1: memref<128x784xf32, #tpu.memory_space<vmem>>, %arg2: memref<784x384xbf16, #tpu.memory_space<vmem>>, %arg3: memref<1x384xf32, #tpu.memory_space<vmem>>, %arg4: memref<384x128xbf16, #tpu.memory_space<vmem>>, %arg5: memref<1x128xf32, #tpu.memory_space<vmem>>, %arg6: memref<128x128xbf16, #tpu.memory_space<vmem>>, %arg7: memref<1x128xf32, #tpu.memory_space<vmem>>, %arg8: memref<128x128xf32, #tpu.memory_space<vmem>>) attributes {dimension_semantics = [#tpu.dimension_semantics<parallel>], iteration_bounds = array<i64: 2>, scalar_prefetch = 0 : i64, scratch_operands = 0 : i64, tpu.core_type = #tpu.core_type<tc>, window_params = [{transform_indices = @transform_0, window_bounds = array<i64: 128, 784>}, {pipeline_mode = #tpu.pipeline_mode<synchronous>, transform_indices = @transform_1, window_bounds = array<i64: 784, 384>}, {pipeline_mode = #tpu.pipeline_mode<synchronous>, transform_indices = @transform_2, window_bounds = array<i64: 1, 384>}, {pipeline_mode = #tpu.pipeline_mode<synchronous>, transform_indices = @transform_3, window_bounds = array<i64: 384, 128>}, {pipeline_mode = #tpu.pipeline_mode<synchronous>, transform_indices = @transform_4, window_bounds = array<i64: 1, 128>}, {pipeline_mode = #tpu.pipeline_mode<synchronous>, transform_indices = @transform_5, window_bounds = array<i64: 128, 128>}, {pipeline_mode = #tpu.pipeline_mode<synchronous>, transform_indices = @transform_6, window_bounds = array<i64: 1, 128>}, {transform_indices = @transform_7, window_bounds = array<i64: 128, 128>}]} {
    %c0 = arith.constant 0 : index
    %c0_0 = arith.constant 0 : index
    %0 = vector.load %arg1[%c0, %c0_0] : memref<128x784xf32, #tpu.memory_space<vmem>>, vector<128x784xf32>
    %1 = arith.truncf %0 : vector<128x784xf32> to vector<128x784xbf16>
    %c0_1 = arith.constant 0 : index
    %c0_2 = arith.constant 0 : index
    %2 = vector.load %arg2[%c0_1, %c0_2] : memref<784x384xbf16, #tpu.memory_space<vmem>>, vector<784x384xbf16>
    %cst = arith.constant dense<0.000000e+00> : vector<128x384xf32>
    %3 = tpu.matmul %1, %2, %cst {dimension_numbers = #tpu.dot_dimension_numbers<[1], [0], [0], [1], [0, 0, 1, 1], [], []>} : vector<128x784xbf16>, vector<784x384xbf16>, vector<128x384xf32> -> vector<128x384xf32>
    %c0_3 = arith.constant 0 : index
    %c0_4 = arith.constant 0 : index
    %4 = vector.load %arg3[%c0_3, %c0_4] : memref<1x384xf32, #tpu.memory_space<vmem>>, vector<1x384xf32>
    %5 = vector.broadcast %4 : vector<1x384xf32> to vector<128x384xf32>
    %6 = arith.addf %3, %5 : vector<128x384xf32>
    %cst_5 = arith.constant 0.000000e+00 : f32
    %7 = vector.broadcast %cst_5 : f32 to vector<128x384xf32>
    %8 = arith.maximumf %6, %7 : vector<128x384xf32>
    %9 = arith.truncf %8 : vector<128x384xf32> to vector<128x384xbf16>
    %c0_6 = arith.constant 0 : index
    %c0_7 = arith.constant 0 : index
    %10 = vector.load %arg4[%c0_6, %c0_7] : memref<384x128xbf16, #tpu.memory_space<vmem>>, vector<384x128xbf16>
    %cst_8 = arith.constant dense<0.000000e+00> : vector<128x128xf32>
    %11 = tpu.matmul %9, %10, %cst_8 {dimension_numbers = #tpu.dot_dimension_numbers<[1], [0], [0], [1], [0, 0, 1, 1], [], []>} : vector<128x384xbf16>, vector<384x128xbf16>, vector<128x128xf32> -> vector<128x128xf32>
    %c0_9 = arith.constant 0 : index
    %c0_10 = arith.constant 0 : index
    %12 = vector.load %arg5[%c0_9, %c0_10] : memref<1x128xf32, #tpu.memory_space<vmem>>, vector<1x128xf32>
    %13 = vector.broadcast %12 : vector<1x128xf32> to vector<128x128xf32>
    %14 = arith.addf %11, %13 : vector<128x128xf32>
    %cst_11 = arith.constant 0.000000e+00 : f32
    %15 = vector.broadcast %cst_11 : f32 to vector<128x128xf32>
    %16 = arith.maximumf %14, %15 : vector<128x128xf32>
    %17 = arith.truncf %16 : vector<128x128xf32> to vector<128x128xbf16>
    %c0_12 = arith.constant 0 : index
    %c0_13 = arith.constant 0 : index
    %18 = vector.load %arg6[%c0_12, %c0_13] : memref<128x128xbf16, #tpu.memory_space<vmem>>, vector<128x128xbf16>
    %cst_14 = arith.constant dense<0.000000e+00> : vector<128x128xf32>
    %19 = tpu.matmul %17, %18, %cst_14 {dimension_numbers = #tpu.dot_dimension_numbers<[1], [0], [0], [1], [0, 0, 1, 1], [], []>} : vector<128x128xbf16>, vector<128x128xbf16>, vector<128x128xf32> -> vector<128x128xf32>
    %c0_15 = arith.constant 0 : index
    %c0_16 = arith.constant 0 : index
    %20 = vector.load %arg7[%c0_15, %c0_16] : memref<1x128xf32, #tpu.memory_space<vmem>>, vector<1x128xf32>
    %21 = vector.broadcast %20 : vector<1x128xf32> to vector<128x128xf32>
    %22 = arith.addf %19, %21 : vector<128x128xf32>
    %c0_17 = arith.constant 0 : index
    %c0_18 = arith.constant 0 : index
    %23 = vector.load %arg8[%c0_17, %c0_18] : memref<128x128xf32, #tpu.memory_space<vmem>>, vector<128x128xf32>
    tpu.vector_store %arg8[%c0_17, %c0_18], %22 {strides = array<i32>} : memref<128x128xf32, #tpu.memory_space<vmem>>, vector<128x128xf32>,
    return
  }
  func.func @transform_0(%arg0: i32) -> (i32, i32) {
    %c0_i32 = arith.constant 0 : i32
    %c0_i32_0 = arith.constant 0 : i32
    return %arg0, %c0_i32 : i32, i32
  }
  func.func @transform_1(%arg0: i32) -> (i32, i32) {
    %c0_i32 = arith.constant 0 : i32
    %c0_i32_0 = arith.constant 0 : i32
    %c0_i32_1 = arith.constant 0 : i32
    return %c0_i32, %c0_i32_0 : i32, i32
  }
  func.func @transform_2(%arg0: i32) -> (i32, i32) {
    %c0_i32 = arith.constant 0 : i32
    %c0_i32_0 = arith.constant 0 : i32
    %c0_i32_1 = arith.constant 0 : i32
    return %c0_i32, %c0_i32_0 : i32, i32
  }
  func.func @transform_3(%arg0: i32) -> (i32, i32) {
    %c0_i32 = arith.constant 0 : i32
    %c0_i32_0 = arith.constant 0 : i32
    %c0_i32_1 = arith.constant 0 : i32
    return %c0_i32, %c0_i32_0 : i32, i32
  }
  func.func @transform_4(%arg0: i32) -> (i32, i32) {
    %c0_i32 = arith.constant 0 : i32
    %c0_i32_0 = arith.constant 0 : i32
    %c0_i32_1 = arith.constant 0 : i32
    return %c0_i32, %c0_i32_0 : i32, i32
  }
  func.func @transform_5(%arg0: i32) -> (i32, i32) {
    %c0_i32 = arith.constant 0 : i32
    %c0_i32_0 = arith.constant 0 : i32
    %c0_i32_1 = arith.constant 0 : i32
    return %c0_i32, %c0_i32_0 : i32, i32
  }
  func.func @transform_6(%arg0: i32) -> (i32, i32) {
    %c0_i32 = arith.constant 0 : i32
    %c0_i32_0 = arith.constant 0 : i32
    %c0_i32_1 = arith.constant 0 : i32
    return %c0_i32, %c0_i32_0 : i32, i32
  }
  func.func @transform_7(%arg0: i32) -> (i32, i32) {
    %c0_i32 = arith.constant 0 : i32
    %c0_i32_0 = arith.constant 0 : i32
    return %arg0, %c0_i32 : i32, i32
  }
}

</mosaic_0001>

<bundles_post_ra>
// kernel: tpu_custom_call.1
= control target key start
LH: loop header
LB: loop body
LE: loop exit
PB: predicated region body
PF: predicated region fallthrough
CT: control target
= control target key end

     0   :  { %12 = vsyncpa [#allocation3], 0  ;;  %s5348_s0 = inlined_call_operand.vmem [shape: f32[256,784], index: 0, kind: input, shape index: {}]   ;;  %s5349_s1 = inlined_call_operand.vmem [shape: bf16[784,384], index: 1, kind: input, shape index: {}]   ;;  %s5350_s2 = inlined_call_operand.vmem [shape: f32[1,384], index: 2, kind: input, shape index: {}]   ;;  %s5351_s3 = inlined_call_operand.vmem [shape: bf16[384,128], index: 3, kind: input, shape index: {}]   ;;  %s5352_s4 = inlined_call_operand.vmem [shape: f32[1,128], index: 4, kind: input, shape index: {}]   ;;  %s5353_s5 = inlined_call_operand.vmem [shape: bf16[128,128], index: 5, kind: input, shape index: {}]   ;;  %s5354_s6 = inlined_call_operand.vmem [shape: f32[1,128], index: 6, kind: input, shape index: {}]   ;;  %s5355_s7 = inlined_call_operand.hbm [shape: f32[256,128], index: 7, kind: output, shape index: {}]  }
   0x1   :  { %14 = vsyncpa [#allocation3 + $0x1], 0  ;;  %s4159_s24 = smov 0   ;;  %s4161_s25 = smov 0  }
   0x2   :  { %s4163_s26 = smov 0   ;;  %s4165_s27 = smov 0  }
   0x3 LB: > { %s4180_s28 = sadd.s32 4294967295, %s4113_s27   ;;  %s3063_s29 = sadd.s32 4294967294, %s4113_s27   ;;  %s4113_s27 = sphi %s4165_s27, %s5362_s27   ;;  %s4109_s26 = sphi %s4163_s26, %s5361_s26   ;;  %s4105_s25 = sphi %s4161_s25, %s5360_s25   ;;  %s4101_s24 = sphi %s4159_s24, %s5359_s24  }
   0x4   : > { %s4184_s30 = sadd.s32 1, %s4113_s27   ;;  %s179_s8 = sadd.s32 1, %s4109_s26 }
   0x5   : > { %s176_s9 = ssub.s32 %s4113_s27, %s4184_s30  ;;  %p189_p0 = scmp.ne.s32.totalorder %s4109_s26, %s4105_s25 }
   0x6   : > { %p177_p1 = scmp.eq.s32.totalorder %s176_s9, 0  ;;  %p190_p2 = scmp.eq.s32.totalorder %s4180_s28, 1 }
   0x7   : > { %p195_p3 = scmp.ne.s32.totalorder %s4105_s25, %s4101_s24  ;;  %p196_p4 = scmp.eq.s32.totalorder %s3063_s29, 1 }
   0x8   : > { %s4195_s10 = scalar_select %p177_p1, %s4109_s26, %s179_s8  }
   0x9   : > { %p4197_p5 = por %p190_p2, %p189_p0  ;;  %p4201_p6 = por %p196_p4, %p195_p3 }
   0xa   : > { %p3066_p7 = scmp.ge.s32.totalorder %s4113_s27, 1  ;;  %p242_p8 = scmp.lt.s32.totalorder %s4113_s27, 3 }
   0xc   : > { %p243_p9 = pnand %p3066_p7, %p242_p8 }
   0xd   : > { %v3823_v0 = vld [vmem:[%s5349_s1 + $0x4] ss:$12 sps:$4 sm:$0xff] (!%p243_p9)   ;;  %v3825_v1 = vld [vmem:[%s5349_s1 + $0xc8] ss:$12 sps:$4 sm:$0xff] (!%p243_p9)   ;;  %v3826_v2 = vld [vmem:[%s5349_s1] ss:$12 sps:$4 sm:$0xff] (!%p243_p9)  }
   0xe   : > { %246 = sbr.rel (%p243_p9) target bundleno = 1005 (0x3ed), region = 48  ;;  %1474 = vmatprep.subr.bf16.mxu0 (!%p243_p9), %v3823_v0  ;;  %3273 = vmatprep.subr.bf16.mxu1 (!%p243_p9), %v3825_v1  ;;  %v3827_v3 = vld [vmem:[%s5349_s1 + $0x8] ss:$12 sps:$4 sm:$0xff] (!%p243_p9)   ;;  %s3068_s21 = sshll.u32 (!%p243_p9), %s4180_s28, 4  ;;  %v3830_v5 = vld [vmem:[%s5349_s1 + $0xe0] ss:$12 sps:$4 sm:$0xff] (!%p243_p9)  }
   0xf   : > { %1475 = vmatpush1.bf16.msra.mxu0 (!%p243_p9), %v3826_v2  ;;  %v3828_v4 = vld [vmem:[%s5349_s1 + $0x1c] ss:$12 sps:$4 sm:$0xff] (!%p243_p9)   ;;  %3274 = vmatpush3.bf16.msra.mxu1 (!%p243_p9), %v3827_v3  ;;  %v3831_v6 = vld [vmem:[%s5349_s1 + $0x18] ss:$12 sps:$4 sm:$0xff] (!%p243_p9)   ;;  %v3832_v7 = vld [vmem:[%s5349_s1 + $0x20] ss:$12 sps:$4 sm:$0xff] (!%p243_p9)  }
  0x10   : > { %1476 = vmatprep.subr.bf16.mxu0 (!%p243_p9), %v3828_v4  ;;  %3275 = vmatprep.subr.bf16.mxu1 (!%p243_p9), %v3830_v5  ;;  %v3833_v8 = vld [vmem:[%s5349_s1 + $0x34] ss:$12 sps:$4 sm:$0xff] (!%p243_p9)   ;;  %p4235_p10 = scmp.lt.s32.totalorder (!%p243_p9), %s3068_s21, 31  ;;  %v3835_v9 = vld [vmem:[%s5349_s1 + $0xf8] ss:$12 sps:$4 sm:$0xff] (!%p243_p9)   ;;  %vm1449_vm0 = vcmask (!%p243_p9), 130048  }
  0x11   : > { %v3836_v10 = vld [vmem:[%s5349_s1 + $0x30] ss:$12 sps:$4 sm:$0xff] (!%p243_p9)   ;;  %v3837_v11 = vld [vmem:[%s5349_s1 + $0x38] ss:$12 sps:$4 sm:$0xff] (!%p243_p9)   ;;  %v3841_v14 = vld [vmem:[%s5349_s1 + $0x48] ss:$12 sps:$4 sm:$0xff] (!%p243_p9)  }
  0x12   : > { %v3838_v12 = vld [vmem:[%s5349_s1 + $0x4c] ss:$12 sps:$4 sm:$0xff] (!%p243_p9)   ;;  %v3840_v13 = vld [vmem:[%s5349_s1 + $0x110] ss:$12 sps:$4 sm:$0xff] (!%p243_p9)   ;;  %v3845_v17 = vld [vmem:[%s5349_s1 + $0x128] ss:$12 sps:$4 sm:$0xff] (!%p243_p9)  }
  0x13   : > { %1477 = vmatpush1.bf16.msra.mxu0 (!%p243_p9), %v3831_v6  ;;  %3276 = vmatpush3.bf16.msra.mxu1 (!%p243_p9), %v3832_v7  ;;  %v3842_v15 = vld [vmem:[%s5349_s1 + $0x50] ss:$12 sps:$4 sm:$0xff] (!%p243_p9)   ;;  %v3846_v18 = vld [vmem:[%s5349_s1 + $0x60] ss:$12 sps:$4 sm:$0xff] (!%p243_p9)   ;;  %v3847_v19 = vld [vmem:[%s5349_s1 + $0x68] ss:$12 sps:$4 sm:$0xff] (!%p243_p9)  }
  0x14   : > { %1478 = vmatprep.subr.bf16.mxu0 (!%p243_p9), %v3833_v8  ;;  %3277 = vmatprep.subr.bf16.mxu1 (!%p243_p9), %v3835_v9  ;;  %v3843_v16 = vld [vmem:[%s5349_s1 + $0x64] ss:$12 sps:$4 sm:$0xff] (!%p243_p9)   ;;  %v3848_v20 = vld [vmem:[%s5349_s1 + $0x7c] ss:$12 sps:$4 sm:$0xff] (!%p243_p9)   ;;  %v3850_v21 = vld [vmem:[%s5349_s1 + $0x140] ss:$12 sps:$4 sm:$0xff] (!%p243_p9)  }
  0x15   : > { %s5364_s21 = smov (!%p4235_p10, %s3068_s21), 31  ;;  %v3851_v22 = vld [vmem:[%s5349_s1 + $0x78] ss:$12 sps:$4 sm:$0xff]   ;;  %v3852_v23 = vld [vmem:[%s5349_s1 + $0x80] ss:$12 sps:$4 sm:$0xff]   ;;  %s272_s9 = sand.u32 1, %s4105_s25  }
  0x16   : > { %s3780_s20 = smul.u32 56, %s5364_s21  ;;  %v3853_v24 = vld [vmem:[%s5349_s1 + $0x94] ss:$12 sps:$4 sm:$0xff]   ;;  %v3855_v25 = vld [vmem:[%s5349_s1 + $0x158] ss:$12 sps:$4 sm:$0xff]   ;;  %s3067_s13 = sshll.u32 %s272_s9, 7 }
  0x17   : > { %1479 = vmatpush1.bf16.msra.mxu0 %v3836_v10  ;;  %3278 = vmatpush3.bf16.msra.mxu1 %v3837_v11  ;;  %v3856_v26 = vld [vmem:[%s5349_s1 + $0x90] ss:$12 sps:$4 sm:$0xff]   ;;  %v3857_v27 = vld [vmem:[%s5349_s1 + $0x98] ss:$12 sps:$4 sm:$0xff]   ;;  %v3861_v30 = vld [vmem:[%s5349_s1 + $0xa8] ss:$12 sps:$4 sm:$0xff]  }
  0x18   : > { %1480 = vmatprep.subr.bf16.mxu0 %v3838_v12  ;;  %3279 = vmatprep.subr.bf16.mxu1 %v3840_v13  ;;  %s4298_s19 = scalar_lea.vmem %s5348_s0, %s3780_s20  ;;  %v3858_v28 = vld [vmem:[%s5349_s1 + $0xac] ss:$12 sps:$4 sm:$0xff]   ;;  %v3860_v29 = vld [vmem:[%s5349_s1 + $0x170] ss:$12 sps:$4 sm:$0xff]   ;;  %v3869_v45 = vld [vmem:[%s5349_s1 + $0xf4] ss:$12 sps:$4 sm:$0xff]  }
  0x19   : > { %v285_v31 = vld [vmem:[%s4298_s19 + $0x8] sm:$0xff]  ;;  %v292_v32 = vld [vmem:[%s4298_s19 + $0x40] sm:$0xff]  ;;  %v3862_v33 = vld [vmem:[%s5349_s1 + $0xb0] ss:$12 sps:$4 sm:$0xff]   ;;  %s5278_s14 = scalar_lea.vmem [#allocation2], %s3067_s13  ;;  %s3272_s15 = sshll.u32 %s4180_s28, 11 }
  0x1a   : > { %v397_v34 = vpack.c.bf16 %v292_v32, %v285_v31  ;;  %v3863_v35 = vld [vmem:[%s5349_s1 + $0xc4] ss:$12 sps:$4 sm:$0xff]   ;;  %v291_v37 = vld [vmem:[%s4298_s19 + $0x38] sm:$0xff]  ;;  %v3865_v41 = vld [vmem:[%s5349_s1 + $0xc0] ss:$12 sps:$4 sm:$0xff]   ;;  %s3001_s21 = sshll.u32 %s5278_s14, 4  ;;  %s5298_s17 = scalar_lea.hbm %s5355_s7, %s3272_s15  ;;  %s5300_s21 = int_to_ptr.vmem [resolvable:$true] %s3001_s21 }
  0x1b   : > { %1481 = vmatpush1.bf16.msra.mxu0 %v3841_v14  ;;  %3280 = vmatpush3.bf16.msra.mxu1 %v3842_v15  ;;  %v284_v36 = vld [vmem:[%s4298_s19] sm:$0xff]  ;;  %v299_v38 = vld [vmem:[%s4298_s19 + $0x78] sm:$0xff]  ;;  %v306_v39 = vld [vmem:[%s4298_s19 + $0xb0] sm:$0xff]  ;;  %s5307_s28 = scalar_lea.sflag [#allocation3], %s272_s9  ;;  %s4051_s22 = scalar_lea.vmem %s5300_s21, 2048 }
  0x1c   : > { %1482 = vmatprep.subr.bf16.mxu0 %v3843_v16  ;;  %3281 = vmatprep.subr.bf16.mxu1 %v3845_v17  ;;  %v4324_v40 = vpack.c.bf16 %v291_v37, %v284_v36  ;;  %v3866_v42 = vld [vmem:[%s5349_s1 + $0xdc] ss:$12 sps:$4 sm:$0xff]   ;;  %v4332_v43 = vpack.c.bf16 %v306_v39, %v299_v38  ;;  %v3868_v44 = vld [vmem:[%s5349_s1 + $0xd8] ss:$12 sps:$4 sm:$0xff]   ;;  %v298_v46 = vld [vmem:[%s4298_s19 + $0x70] sm:$0xff]  ;;  %p4052_p11 = scmp.ne.s32.totalorder %s5300_s21, %s4051_s22  ;;  %s4116_s23 = smov [#allocation2]  }
  0x1d   : > { %1958 = vmatprep.mubr.bf16.mxu1 %v397_v34  ;;  %1506 = vmatprep.mubr.bf16.mxu0 %v397_v34  ;;  %v305_v47 = vld [vmem:[%s4298_s19 + $0xa8] sm:$0xff]  ;;  %v320_v49 = vld [vmem:[%s4298_s19 + $0x120] sm:$0xff]  ;;  %v3871_v51 = vld [vmem:[%s5349_s1 + $0xf0] ss:$12 sps:$4 sm:$0xff]   ;;  %s4055_s29 = sshll.u32 %s4116_s23, 4  ;;  %s4056_s29 = int_to_ptr.vmem [resolvable:$false] %s4055_s29 }
  0x1e   : > { %v313_v48 = vld [vmem:[%s4298_s19 + $0xe8] sm:$0xff]  ;;  %v4346_v50 = vpack.c.bf16 %v305_v47, %v298_v46  ;;  %v3875_v55 = vld [vmem:[%s5349_s1 + $0x124] ss:$12 sps:$4 sm:$0xff]   ;;  %v319_v57 = vld [vmem:[%s4298_s19 + $0x118] sm:$0xff]  ;;  %p4053_p12 = pnand %p4052_p11, %p4197_p5  ;;  %s4057_s8 = scalar_lea.vmem %s4056_s29, 4096 }
  0x1f   : > { %1483 = vmatpush1.bf16.msra.mxu0 %v3846_v18  ;;  %3282 = vmatpush3.bf16.msra.mxu1 %v3847_v19  ;;  %v3872_v52 = vld [vmem:[%s5349_s1 + $0x10c] ss:$12 sps:$4 sm:$0xff]   ;;  %v4354_v53 = vpack.c.bf16 %v320_v49, %v313_v48  ;;  %v3874_v54 = vld [vmem:[%s5349_s1 + $0x108] ss:$12 sps:$4 sm:$0xff]   ;;  %v312_v56 = vld [vmem:[%s4298_s19 + $0xe0] sm:$0xff]  ;;  %p4058_p0 = scmp.lt.s32.totalorder %s5300_s21, %s4056_s29  ;;  %p4059_p1 = scmp.lt.s32.totalorder %s4057_s8, %s4051_s22 }
  0x20   : > { %1484 = vmatprep.subr.bf16.mxu0 %v3848_v20  ;;  %3283 = vmatprep.subr.bf16.mxu1 %v3850_v21  ;;  %v327_v58 = vld [vmem:[%s4298_s19 + $0x158] sm:$0xff]  ;;  %v334_v59 = vld [vmem:[%s4298_s19 + $0x190] sm:$0xff]  ;;  %v4374_v62 = vpack.c.bf16 %v319_v57, %v312_v56  ;;  %v3877_v63 = vld [vmem:[%s5349_s1 + $0x120] ss:$12 sps:$4 sm:$0xff]   ;;  %p4054_p13 = pneg %p4053_p12 }
  0x21   : > { %v3890_v60 = vld [vmem:[%s5349_s1 + $0x248] ss:$12 sps:$4 sm:$0xff]   ;;  %v4382_v1 = vpack.c.bf16 %v334_v59, %v327_v58  ;;  %v3895_v2 = vld [vmem:[%s5349_s1 + $0x260] ss:$12 sps:$4 sm:$0xff]   ;;  %v3880_v3 = vld [vmem:[%s5349_s1 + $0x138] ss:$12 sps:$4 sm:$0xff]   ;;  %p4060_p2 = por %p4059_p1, %p4058_p0 }
  0x22   : > { %v3891_v61 = vld [vmem:[%s5349_s1 + $0x188] ss:$12 sps:$4 sm:$0xff]   ;;  %v3896_v4 = vld [vmem:[%s5349_s1 + $0x1a0] ss:$12 sps:$4 sm:$0xff]   ;;  %v3900_v10 = vld [vmem:[%s5349_s1 + $0x278] ss:$12 sps:$4 sm:$0xff]  }
  0x23   : > { %1485 = vmatpush1.bf16.msra.mxu0 %v3851_v22  ;;  %3284 = vmatpush3.bf16.msra.mxu1 %v3852_v23  ;;  %v3878_v0 = vld [vmem:[%s5349_s1 + $0x13c] ss:$12 sps:$4 sm:$0xff]   ;;  %v3881_v5 = vld [vmem:[%s5349_s1 + $0x154] ss:$12 sps:$4 sm:$0xff]   ;;  %v3901_v11 = vld [vmem:[%s5349_s1 + $0x1b8] ss:$12 sps:$4 sm:$0xff]   ;;  %p4061_p3 = pnand %p4060_p2, %p4054_p13 }
  0x24   : > { %1486 = vmatprep.subr.bf16.mxu0 %v3853_v24  ;;  %3285 = vmatprep.subr.bf16.mxu1 %v3855_v25  ;;  %v326_v6 = vld [vmem:[%s4298_s19 + $0x150] sm:$0xff]  ;;  %v333_v7 = vld [vmem:[%s4298_s19 + $0x188] sm:$0xff]  ;;  %v348_v9 = vld [vmem:[%s4298_s19 + $0x200] sm:$0xff] }
  0x25   : > { %v341_v8 = vld [vmem:[%s4298_s19 + $0x1c8] sm:$0xff]  ;;  %v4408_v12 = vpack.c.bf16 %v333_v7, %v326_v6  ;;  %v3883_v13 = vld [vmem:[%s5349_s1 + $0x150] ss:$12 sps:$4 sm:$0xff]   ;;  %v340_v20 = vld [vmem:[%s4298_s19 + $0x1c0] sm:$0xff] }
  0x26   : > { %v3884_v14 = vld [vmem:[%s5349_s1 + $0x16c] ss:$12 sps:$4 sm:$0xff]   ;;  %v4416_v15 = vpack.c.bf16 %v348_v9, %v341_v8  ;;  %v3905_v16 = vld [vmem:[%s5349_s1 + $0x290] ss:$12 sps:$4 sm:$0xff]   ;;  %v3886_v18 = vld [vmem:[%s5349_s1 + $0x168] ss:$12 sps:$4 sm:$0xff]  }
  0x27   : > { %1487 = vmatpush1.bf16.msra.mxu0 %v3856_v26  ;;  %3286 = vmatpush3.bf16.msra.mxu1 %v3857_v27  ;;  %v3906_v17 = vld [vmem:[%s5349_s1 + $0x1d0] ss:$12 sps:$4 sm:$0xff]   ;;  %v3910_v24 = vld [vmem:[%s5349_s1 + $0x2a8] ss:$12 sps:$4 sm:$0xff]   ;;  %v3887_v26 = vld [vmem:[%s5349_s1 + $0x180] ss:$12 sps:$4 sm:$0xff]  }
  0x28   : > { %1488 = vmatprep.subr.bf16.mxu0 %v3858_v28  ;;  %3287 = vmatprep.subr.bf16.mxu1 %v3860_v29  ;;  %v3889_v19 = vld [vmem:[%s5349_s1 + $0x184] ss:$12 sps:$4 sm:$0xff]   ;;  %v347_v21 = vld [vmem:[%s4298_s19 + $0x1f8] sm:$0xff]  ;;  %v3911_v25 = vld [vmem:[%s5349_s1 + $0x1e8] ss:$12 sps:$4 sm:$0xff]  }
  0x29   : > { %v355_v22 = vld [vmem:[%s4298_s19 + $0x238] sm:$0xff]  ;;  %v362_v23 = vld [vmem:[%s4298_s19 + $0x270] sm:$0xff]  ;;  %v4445_v27 = vpack.c.bf16 %v347_v21, %v340_v20  ;;  %v3915_v29 = vld [vmem:[%s5349_s1 + $0x2c0] ss:$12 sps:$4 sm:$0xff]  }
  0x2a   : > { %v3894_v28 = vld [vmem:[%s5349_s1 + $0x19c] ss:$12 sps:$4 sm:$0xff]   ;;  %v3916_v31 = vld [vmem:[%s5349_s1 + $0x200] ss:$12 sps:$4 sm:$0xff]   ;;  %v3892_v32 = vld [vmem:[%s5349_s1 + $0x198] ss:$12 sps:$4 sm:$0xff]  }
  0x2b   : > { %1489 = vmatpush1.bf16.msra.mxu0 %v3861_v30  ;;  %3288 = vmatpush3.bf16.msra.mxu1 %v3862_v33  ;;  %v4453_v30 = vpack.c.bf16 %v362_v23, %v355_v22  ;;  %v3899_v33 = vld [vmem:[%s5349_s1 + $0x1b4] ss:$12 sps:$4 sm:$0xff]   ;;  %v369_v36 = vld [vmem:[%s4298_s19 + $0x2a8] sm:$0xff]  ;;  %v3920_v38 = vld [vmem:[%s5349_s1 + $0x2d8] ss:$12 sps:$4 sm:$0xff]  }
  0x2c   : > { %1490 = vmatprep.subr.bf16.mxu0 %v3863_v35  ;;  %3337 = vmatprep.subr.bf16.mxu1 %v3890_v60  ;;  %v354_v34 = vld [vmem:[%s4298_s19 + $0x230] sm:$0xff]  ;;  %v361_v35 = vld [vmem:[%s4298_s19 + $0x268] sm:$0xff]  ;;  %v376_v37 = vld [vmem:[%s4298_s19 + $0x2e0] sm:$0xff] }
  0x2d   : > { %v3921_v39 = vld [vmem:[%s5349_s1 + $0x218] ss:$12 sps:$4 sm:$0xff]   ;;  %v3902_v46 = vld [vmem:[%s5349_s1 + $0x1c8] ss:$12 sps:$4 sm:$0xff]   ;;  %v3927_v9 = vld [vmem:[%s5349_s1 + $0x240] ss:$12 sps:$4 sm:$0xff]  }
  0x2e   : > { %1959 = vmatmul.mubr.bf16.vlgmr.msra.gmra.mrb[0].mxu1 %v4324_v40  ;;  %v3909_v47 = vld [vmem:[%s5349_s1 + $0x1e4] ss:$12 sps:$4 sm:$0xff]   ;;  %v375_v49 = vld [vmem:[%s4298_s19 + $0x2d8] sm:$0xff]  ;;  %v3919_v57 = vld [vmem:[%s5349_s1 + $0x214] ss:$12 sps:$4 sm:$0xff]  }
  0x2f   : > { %1491 = vmatpush1.bf16.msra.mxu0 %v3865_v41  ;;  %1966 = vmatprep.mubr.bf16.mxu1 %v4332_v43  ;;  %v4481_v41 = vpack.c.bf16 %v361_v35, %v354_v34  ;;  %v368_v48 = vld [vmem:[%s4298_s19 + $0x2a0] sm:$0xff]  ;;  %v382_v58 = vld [vmem:[%s4298_s19 + $0x310] sm:$0xff]  ;;  %v389_v59 = vld [vmem:[%s4298_s19 + $0x348] sm:$0xff] }
  0x30   : > { %1492 = vmatprep.subr.bf16.mxu0 %v3866_v42  ;;  %3338 = vmatpush3.bf16.msra.mxu1 %v3891_v61  ;;  %v3904_v42 = vld [vmem:[%s5349_s1 + $0x1cc] ss:$12 sps:$4 sm:$0xff]   ;;  %v294_v61 = vld [vmem:[%s4298_s19 + $0x50] sm:$0xff]  ;;  %v308_v8 = vld [vmem:[%s4298_s19 + $0xc0] sm:$0xff] }
  0x31   : > { %3339 = vmatprep.subr.bf16.mxu1 %v3895_v2  ;;  %v3912_v56 = vld [vmem:[%s5349_s1 + $0x1f8] ss:$12 sps:$4 sm:$0xff]   ;;  %v3922_v2 = vld [vmem:[%s5349_s1 + $0x228] ss:$12 sps:$4 sm:$0xff]   ;;  %v3960_v21 = vld [vmem:[%s5349_s1 + $0x320] ss:$12 sps:$4 sm:$0xff]  }
  0x32   : > { %v287_v60 = vld [vmem:[%s4298_s19 + $0x18] sm:$0xff]  ;;  %v301_v6 = vld [vmem:[%s4298_s19 + $0x88] sm:$0xff]  ;;  %v322_v20 = vld [vmem:[%s4298_s19 + $0x130] sm:$0xff] }
  0x33   : > { %1493 = vmatpush1.bf16.msra.mxu0 %v3868_v44  ;;  %v4489_v44 = vpack.c.bf16 %v376_v37, %v369_v36  ;;  %v3954_v7 = vld [vmem:[%s5349_s1 + $0x3c8] ss:$12 sps:$4 sm:$0xff]   ;;  %v3964_v22 = vld [vmem:[%s5349_s1 + $0x3f8] ss:$12 sps:$4 sm:$0xff]   ;;  %v3933_v23 = vld [vmem:[%s5349_s1 + $0x270] ss:$12 sps:$4 sm:$0xff]  }
  0x34   : > { %1494 = vmatprep.subr.bf16.mxu0 %v3869_v45  ;;  %3340 = vmatpush3.bf16.msra.mxu1 %v3896_v4  ;;  %v3926_v45 = vld [vmem:[%s5349_s1 + $0x230] ss:$12 sps:$4 sm:$0xff]   ;;  %v336_v34 = vld [vmem:[%s4298_s19 + $0x1a0] sm:$0xff]  ;;  %v3974_v36 = vld [vmem:[%s5349_s1 + $0x428] ss:$12 sps:$4 sm:$0xff]  }
  0x35   : > { %3341 = vmatprep.subr.bf16.mxu1 %v3900_v10  ;;  %v286_v4 = vld [vmem:[%s4298_s19 + $0x10] sm:$0xff]  ;;  %v3939_v37 = vld [vmem:[%s5349_s1 + $0x2a0] ss:$12 sps:$4 sm:$0xff]  }
  0x36   : > { %1967 = vmatmul.mubr.bf16.gmra.mrb[4].mxu1 %v4346_v50  ;;  %v3970_v35 = vld [vmem:[%s5349_s1 + $0x350] ss:$12 sps:$4 sm:$0xff]  }
  0x37   : > { %1495 = vmatpush1.bf16.msra.mxu0 %v3871_v51  ;;  %1974 = vmatprep.mubr.bf16.mxu1 %v4354_v53  ;;  %v390_v51 = vld [vmem:[%s4298_s19 + $0x350] sm:$0xff] }
  0x38   : > { %1496 = vmatprep.subr.bf16.mxu0 %v3872_v52  ;;  %3342 = vmatpush3.bf16.msra.mxu1 %v3901_v11  ;;  %v3907_v52 = vld [vmem:[%s5349_s1 + $0x1e0] ss:$12 sps:$4 sm:$0xff]   ;;  %v3932_v11 = vld [vmem:[%s5349_s1 + $0x25c] ss:$12 sps:$4 sm:$0xff]  }
  0x39   : > { %3343 = vmatprep.subr.bf16.mxu1 %v3905_v16  ;;  %v3935_v16 = vld [vmem:[%s5349_s1 + $0x274] ss:$12 sps:$4 sm:$0xff]  }
  0x3b   : > { %1497 = vmatpush1.bf16.msra.mxu0 %v3874_v54  ;;  %v4511_v54 = vpack.c.bf16 %v375_v49, %v368_v48  ;;  %v350_v48 = vld [vmem:[%s4298_s19 + $0x210] sm:$0xff]  ;;  %v3980_v49 = vld [vmem:[%s5349_s1 + $0x380] ss:$12 sps:$4 sm:$0xff]  }
  0x3c   : > { %1498 = vmatprep.subr.bf16.mxu0 %v3875_v55  ;;  %3344 = vmatpush3.bf16.msra.mxu1 %v3906_v17  ;;  %v300_v17 = vld [vmem:[%s4298_s19 + $0x80] sm:$0xff] }
  0x3d   : > { %3345 = vmatprep.subr.bf16.mxu1 %v3910_v24 }
  0x3e   : > { %1975 = vmatmul.mubr.bf16.gmra.mrb[8].mxu1 %v4374_v62 }
  0x3f   : > { %1499 = vmatpush1.bf16.msra.mxu0 %v3877_v63  ;;  %1982 = vmatprep.mubr.bf16.mxu1 %v4382_v1  ;;  %v4535_v63 = vpack.c.bf16 %v389_v59, %v382_v58  ;;  %v3953_v58 = vld [vmem:[%s5349_s1 + $0x304] ss:$12 sps:$4 sm:$0xff]  }
  0x40   : > { %1500 = vmatprep.subr.bf16.mxu0 %v3878_v0  ;;  %3346 = vmatpush3.bf16.msra.mxu1 %v3911_v25  ;;  %v3924_v0 = vld [vmem:[%s5349_s1 + $0x22c] ss:$12 sps:$4 sm:$0xff]   ;;  %v342_v59 = vld [vmem:[%s4298_s19 + $0x1d0] sm:$0xff] }
  0x41   : > { %3347 = vmatprep.subr.bf16.mxu1 %v3915_v29  ;;  %v3938_v25 = vld [vmem:[%s5349_s1 + $0x28c] ss:$12 sps:$4 sm:$0xff]   ;;  %v3969_v29 = vld [vmem:[%s5349_s1 + $0x410] ss:$12 sps:$4 sm:$0xff]  }
  0x43   : > { %1501 = vmatpush1.bf16.msra.mxu0 %v3880_v3  ;;  %v3929_v3 = vld [vmem:[%s5349_s1 + $0x244] ss:$12 sps:$4 sm:$0xff]  }
  0x44   : > { %1502 = vmatprep.subr.bf16.mxu0 %v3881_v5  ;;  %3348 = vmatpush3.bf16.msra.mxu1 %v3916_v31  ;;  %v293_v5 = vld [vmem:[%s4298_s19 + $0x48] sm:$0xff]  ;;  %v314_v31 = vld [vmem:[%s4298_s19 + $0xf0] sm:$0xff] }
  0x45   : > { %3349 = vmatprep.subr.bf16.mxu1 %v3920_v38  ;;  %v4562_v10 = vpack.c.bf16 %v293_v5, %v286_v4  ;;  %v3956_v4 = vld [vmem:[%s5349_s1 + $0x318] ss:$12 sps:$4 sm:$0xff]   ;;  %v3963_v5 = vld [vmem:[%s5349_s1 + $0x334] ss:$12 sps:$4 sm:$0xff]  }
  0x46   : > { %1983 = vmatmul.mubr.bf16.gmra.mrb[12].mxu1 %v4408_v12 }
  0x47   : > { %1503 = vmatpush1.bf16.msra.mxu0 %v3883_v13  ;;  %1990 = vmatprep.mubr.bf16.mxu1 %v4416_v15  ;;  %v4570_v13 = vpack.c.bf16 %v308_v8, %v301_v6  ;;  %v356_v6 = vld [vmem:[%s4298_s19 + $0x240] sm:$0xff]  ;;  %v371_v8 = vld [vmem:[%s4298_s19 + $0x2b8] sm:$0xff] }
  0x48   : > { %1504 = vmatprep.subr.bf16.mxu0 %v3884_v14  ;;  %3350 = vmatpush3.bf16.msra.mxu1 %v3921_v39  ;;  %v3955_v14 = vld [vmem:[%s5349_s1 + $0x308] ss:$12 sps:$4 sm:$0xff]  }
  0x49   : > { %v3944_v39 = vld [vmem:[%s5349_s1 + $0x2bc] ss:$12 sps:$4 sm:$0xff]  }
  0x4b   : > { %1505 = vmatpush1.bf16.msra.mxu0 %v3886_v18  ;;  %v307_v18 = vld [vmem:[%s4298_s19 + $0xb8] sm:$0xff] }
  0x4c   : > { %1587 = vmatprep.subr.bf16.mxu0 %v3889_v19  ;;  %v315_v19 = vld [vmem:[%s4298_s19 + $0xf8] sm:$0xff]  ;;  %v4598_v24 = vpack.c.bf16 %v307_v18, %v300_v17  ;;  %v377_v17 = vld [vmem:[%s4298_s19 + $0x2e8] sm:$0xff] }
  0x4d   : > { %v385_v18 = vld [vmem:[%s4298_s19 + $0x328] sm:$0xff] }
  0x4e   : > { %1507 = vmatmul.mubr.bf16.vlgmr.msra.gmra.mrb[0].mxu0 %v4324_v40  ;;  %1991 = vmatmul.mubr.bf16.gmra.mrb[16].mxu1 %v4445_v27  ;;  %v3897_v40 = vld [vmem:[%s5349_s1 + $0x1b0] ss:$12 sps:$4 sm:$0xff]  }
  0x4f   : > { %1588 = vmatpush1.bf16.msra.mxu0 %v3887_v26  ;;  %1516 = vmatprep.mubr.bf16.mxu0 %v4332_v43  ;;  %v3925_v43 = vld [vmem:[%s5349_s1 + $0x2f0] ss:$12 sps:$4 sm:$0xff]   ;;  %v3936_v26 = vld [vmem:[%s5349_s1 + $0x288] ss:$12 sps:$4 sm:$0xff]  }
  0x50   : > { %1589 = vmatprep.subr.bf16.mxu0 %v3894_v28  ;;  %1998 = vmatprep.mubr.bf16.mxu1 %v4453_v30  ;;  %v3965_v28 = vld [vmem:[%s5349_s1 + $0x338] ss:$12 sps:$4 sm:$0xff]  }
  0x51   : > { %3351 = vmatprep.subr.bf16.mxu1 %v3925_v43  ;;  %v3979_v43 = vld [vmem:[%s5349_s1 + $0x440] ss:$12 sps:$4 sm:$0xff]  }
  0x52   : > { %3352 = vmatpush3.bf16.msra.mxu1 %v3926_v45  ;;  %v328_v45 = vld [vmem:[%s4298_s19 + $0x160] sm:$0xff] }
  0x53   : > { %1590 = vmatpush1.bf16.msra.mxu0 %v3892_v32  ;;  %3401 = vmatprep.subr.bf16.mxu1 %v3954_v7  ;;  %v321_v32 = vld [vmem:[%s4298_s19 + $0x128] sm:$0xff]  ;;  %v363_v7 = vld [vmem:[%s4298_s19 + $0x278] sm:$0xff] }
  0x54   : > { %1591 = vmatprep.subr.bf16.mxu0 %v3899_v33  ;;  %v329_v33 = vld [vmem:[%s4298_s19 + $0x168] sm:$0xff]  ;;  %v4634_v38 = vpack.c.bf16 %v321_v32, %v314_v31  ;;  %v296_v31 = vld [vmem:[%s4298_s19 + $0x60] sm:$0xff] }
  0x56   : > { %1517 = vmatmul.mubr.bf16.gmra.mrb[4].mxu0 %v4346_v50  ;;  %1999 = vmatmul.mubr.bf16.gmra.mrb[20].mxu1 %v4481_v41  ;;  %v383_v50 = vld [vmem:[%s4298_s19 + $0x318] sm:$0xff] }
  0x57   : > { %1592 = vmatpush1.bf16.msra.mxu0 %v3897_v40  ;;  %1526 = vmatprep.mubr.bf16.mxu0 %v4354_v53  ;;  %v3914_v53 = vld [vmem:[%s5349_s1 + $0x1fc] ss:$12 sps:$4 sm:$0xff]   ;;  %v4516_v55 = vpack.c.bf16 %v390_v51, %v383_v50  ;;  %v3942_v40 = vld [vmem:[%s5349_s1 + $0x2b8] ss:$12 sps:$4 sm:$0xff]  }
  0x58   : > { %1593 = vmatprep.subr.bf16.mxu0 %v3904_v42  ;;  %2006 = vmatprep.mubr.bf16.mxu1 %v4489_v44  ;;  %v3975_v42 = vld [vmem:[%s5349_s1 + $0x368] ss:$12 sps:$4 sm:$0xff]   ;;  %v3984_v50 = vld [vmem:[%s5349_s1 + $0x458] ss:$12 sps:$4 sm:$0xff]   ;;  %v3945_v51 = vld [vmem:[%s5349_s1 + $0x2d0] ss:$12 sps:$4 sm:$0xff]  }
  0x5b   : > { %1594 = vmatpush1.bf16.msra.mxu0 %v3902_v46  ;;  %v335_v46 = vld [vmem:[%s4298_s19 + $0x198] sm:$0xff] }
  0x5c   : > { %1595 = vmatprep.subr.bf16.mxu0 %v3909_v47  ;;  %v343_v47 = vld [vmem:[%s4298_s19 + $0x1d8] sm:$0xff] }
  0x5e   : > { %1527 = vmatmul.mubr.bf16.gmra.mrb[8].mxu0 %v4374_v62  ;;  %2007 = vmatmul.mubr.bf16.gmra.mrb[24].mxu1 %v4511_v54  ;;  %v3917_v62 = vld [vmem:[%s5349_s1 + $0x210] ss:$12 sps:$4 sm:$0xff]  }
  0x5f   : > { %1596 = vmatpush1.bf16.msra.mxu0 %v3907_v52  ;;  %1536 = vmatprep.mubr.bf16.mxu0 %v4382_v1  ;;  %v4540_v1 = vpack.c.bf16 %v294_v61, %v287_v60  ;;  %v4670_v52 = vpack.c.bf16 %v335_v46, %v328_v45  ;;  %v349_v60 = vld [vmem:[%s4298_s19 + $0x208] sm:$0xff]  ;;  %v3999_v46 = vld [vmem:[%s5349_s1 + $0x3f4] ss:$12 sps:$4 sm:$0xff]  }
  0x60   : > { %1597 = vmatprep.subr.bf16.mxu0 %v3914_v53  ;;  %2014 = vmatprep.mubr.bf16.mxu1 %v4516_v55  ;;  %v4675_v53 = vpack.c.bf16 %v350_v48, %v343_v47  ;;  %v357_v61 = vld [vmem:[%s4298_s19 + $0x248] sm:$0xff]  ;;  %v302_v47 = vld [vmem:[%s4298_s19 + $0x90] sm:$0xff] }
  0x61   : > { %v309_v48 = vld [vmem:[%s4298_s19 + $0xc8] sm:$0xff] }
  0x63   : > { %1598 = vmatpush1.bf16.msra.mxu0 %v3912_v56  ;;  %v3989_v56 = vld [vmem:[%s5349_s1 + $0x470] ss:$12 sps:$4 sm:$0xff]  }
  0x64   : > { %1599 = vmatprep.subr.bf16.mxu0 %v3919_v57  ;;  %v3948_v57 = vld [vmem:[%s5349_s1 + $0x2e8] ss:$12 sps:$4 sm:$0xff]  }
  0x66   : > { %1537 = vmatmul.mubr.bf16.gmra.mrb[12].mxu0 %v4408_v12  ;;  %2015 = vmatmul.mubr.bf16.gmra.mrb[28].mxu1 %v4535_v63  ;;  %v3930_v12 = vld [vmem:[%s5349_s1 + $0x258] ss:$12 sps:$4 sm:$0xff]  }
  0x67   : > { %1600 = vmatpush1.bf16.msra.mxu0 %v3917_v62  ;;  %1546 = vmatprep.mubr.bf16.mxu0 %v4416_v15  ;;  %v3959_v15 = vld [vmem:[%s5349_s1 + $0x3e0] ss:$12 sps:$4 sm:$0xff]   ;;  %v3990_v62 = vld [vmem:[%s5349_s1 + $0x3b0] ss:$12 sps:$4 sm:$0xff]  }
  0x68   : > { %1601 = vmatprep.subr.bf16.mxu0 %v3924_v0  ;;  %2055 = vmatprep.mubr.bf16.mxu1 %v4540_v1  ;;  %v3951_v0 = vld [vmem:[%s5349_s1 + $0x300] ss:$12 sps:$4 sm:$0xff]  }
  0x6b   : > { %1602 = vmatpush1.bf16.msra.mxu0 %v3922_v2  ;;  %v3958_v2 = vld [vmem:[%s5349_s1 + $0x31c] ss:$12 sps:$4 sm:$0xff]  }
  0x6c   : > { %1603 = vmatprep.subr.bf16.mxu0 %v3929_v3 }
  0x6e   : > { %1547 = vmatmul.mubr.bf16.gmra.mrb[16].mxu0 %v4445_v27  ;;  %2056 = vmatmul.mubr.bf16.vlgmr.msra.gmra.mrb[32].mxu1 %v4562_v10  ;;  %v4606_v27 = vpack.c.bf16 %v322_v20, %v315_v19  ;;  %v392_v19 = vld [vmem:[%s4298_s19 + $0x360] sm:$0xff] }
  0x6f   : > { %1604 = vmatpush1.bf16.msra.mxu0 %v3927_v9  ;;  %1556 = vmatprep.mubr.bf16.mxu0 %v4453_v30  ;;  %v3941_v30 = vld [vmem:[%s5349_s1 + $0x2a4] ss:$12 sps:$4 sm:$0xff]   ;;  %v3971_v20 = vld [vmem:[%s5349_s1 + $0x360] ss:$12 sps:$4 sm:$0xff]  }
  0x70   : > { %1605 = vmatprep.subr.bf16.mxu0 %v3932_v11  ;;  %2063 = vmatprep.mubr.bf16.mxu1 %v4570_v13  ;;  %v378_v9 = vld [vmem:[%s4298_s19 + $0x2f0] sm:$0xff]  ;;  %v4727_v11 = vpack.c.bf16 %v363_v7, %v356_v6  ;;  %v352_v6 = vld [vmem:[%s4298_s19 + $0x220] sm:$0xff] }
  0x71   : > { %3402 = vmatpush3.bf16.msra.mxu1 %v3955_v14  ;;  %v3966_v14 = vld [vmem:[%s5349_s1 + $0x348] ss:$12 sps:$4 sm:$0xff]   ;;  %v4009_v7 = vld [vmem:[%s5349_s1 + $0x450] ss:$12 sps:$4 sm:$0xff]  }
  0x72   : > { %3403 = vmatprep.subr.bf16.mxu1 %v3959_v15  ;;  %v3973_v15 = vld [vmem:[%s5349_s1 + $0x364] ss:$12 sps:$4 sm:$0xff]  }
  0x73   : > { %1606 = vmatpush1.bf16.msra.mxu0 %v3930_v12  ;;  %v3968_v12 = vld [vmem:[%s5349_s1 + $0x34c] ss:$12 sps:$4 sm:$0xff]  }
  0x74   : > { %1607 = vmatprep.subr.bf16.mxu0 %v3935_v16  ;;  %v370_v16 = vld [vmem:[%s4298_s19 + $0x2b0] sm:$0xff] }
  0x75   : > { %3404 = vmatpush3.bf16.msra.mxu1 %v3960_v21  ;;  %v4751_v21 = vpack.c.bf16 %v377_v17, %v370_v16  ;;  %v366_v16 = vld [vmem:[%s4298_s19 + $0x290] sm:$0xff]  ;;  %v4015_v17 = vld [vmem:[%s5349_s1 + $0x480] ss:$12 sps:$4 sm:$0xff]  }
  0x76   : > { %1557 = vmatmul.mubr.bf16.gmra.mrb[20].mxu0 %v4481_v41  ;;  %3405 = vmatprep.subr.bf16.mxu1 %v3964_v22  ;;  %v4642_v41 = vpack.c.bf16 %v336_v34, %v329_v33  ;;  %v3978_v22 = vld [vmem:[%s5349_s1 + $0x37c] ss:$12 sps:$4 sm:$0xff]   ;;  %v3988_v33 = vld [vmem:[%s5349_s1 + $0x3ac] ss:$12 sps:$4 sm:$0xff]  }
  0x77   : > { %2064 = vmatmul.mubr.bf16.gmra.mrb[36].mxu1 %v4598_v24  ;;  %1608 = vmatpush1.bf16.msra.mxu0 %v3933_v23  ;;  %v4756_v23 = vpack.c.bf16 %v392_v19, %v385_v18  ;;  %v3986_v34 = vld [vmem:[%s5349_s1 + $0x3a8] ss:$12 sps:$4 sm:$0xff]  }
  0x78   : > { %1609 = vmatprep.subr.bf16.mxu0 %v3938_v25  ;;  %1566 = vmatprep.mubr.bf16.mxu0 %v4489_v44  ;;  %v3947_v44 = vld [vmem:[%s5349_s1 + $0x2d4] ss:$12 sps:$4 sm:$0xff]   ;;  %v3976_v25 = vld [vmem:[%s5349_s1 + $0x378] ss:$12 sps:$4 sm:$0xff]  }
  0x79   : > { %2071 = vmatprep.mubr.bf16.mxu1 %v4606_v27  ;;  %3406 = vmatpush3.bf16.msra.mxu1 %v3965_v28  ;;  %v391_v28 = vld [vmem:[%s4298_s19 + $0x358] sm:$0xff] }
  0x7a   : > { %3407 = vmatprep.subr.bf16.mxu1 %v3969_v29  ;;  %v3981_v29 = vld [vmem:[%s5349_s1 + $0x390] ss:$12 sps:$4 sm:$0xff]  }
  0x7b   : > { %1610 = vmatpush1.bf16.msra.mxu0 %v3936_v26  ;;  %v3983_v26 = vld [vmem:[%s5349_s1 + $0x394] ss:$12 sps:$4 sm:$0xff]  }
  0x7c   : > { %1611 = vmatprep.subr.bf16.mxu0 %v3941_v30  ;;  %v289_v30 = vld [vmem:[%s4298_s19 + $0x28] sm:$0xff] }
  0x7d   : > { %3408 = vmatpush3.bf16.msra.mxu1 %v3970_v35  ;;  %v4786_v35 = vpack.c.bf16 %v296_v31, %v289_v30 }
  0x7e   : > { %1567 = vmatmul.mubr.bf16.gmra.mrb[24].mxu0 %v4511_v54  ;;  %3409 = vmatprep.subr.bf16.mxu1 %v3974_v36  ;;  %v3950_v54 = vld [vmem:[%s5349_s1 + $0x2ec] ss:$12 sps:$4 sm:$0xff]   ;;  %v3993_v36 = vld [vmem:[%s5349_s1 + $0x3c4] ss:$12 sps:$4 sm:$0xff]  }
  0x7f   : > { %2072 = vmatmul.mubr.bf16.gmra.mrb[40].mxu1 %v4634_v38  ;;  %1612 = vmatpush1.bf16.msra.mxu0 %v3939_v37  ;;  %v288_v37 = vld [vmem:[%s4298_s19 + $0x20] sm:$0xff] }
  0x80   : > { %1613 = vmatprep.subr.bf16.mxu0 %v3944_v39  ;;  %1576 = vmatprep.mubr.bf16.mxu0 %v4516_v55  ;;  %v3985_v55 = vld [vmem:[%s5349_s1 + $0x398] ss:$12 sps:$4 sm:$0xff]  }
  0x81   : > { %2079 = vmatprep.mubr.bf16.mxu1 %v4642_v41  ;;  %3410 = vmatpush3.bf16.msra.mxu1 %v3975_v42  ;;  %v303_v39 = vld [vmem:[%s4298_s19 + $0x98] sm:$0xff] }
  0x82   : > { %3411 = vmatprep.subr.bf16.mxu1 %v3979_v43  ;;  %v3996_v42 = vld [vmem:[%s5349_s1 + $0x3dc] ss:$12 sps:$4 sm:$0xff]  }
  0x83   : > { %1614 = vmatpush1.bf16.msra.mxu0 %v3942_v40  ;;  %v310_v40 = vld [vmem:[%s4298_s19 + $0xd0] sm:$0xff] }
  0x84   : > { %1615 = vmatprep.subr.bf16.mxu0 %v3947_v44  ;;  %v3994_v44 = vld [vmem:[%s5349_s1 + $0x3d8] ss:$12 sps:$4 sm:$0xff]   ;;  %v4810_v45 = vpack.c.bf16 %v310_v40, %v303_v39  ;;  %v318_v40 = vld [vmem:[%s4298_s19 + $0x110] sm:$0xff] }
  0x85   : > { %3412 = vmatpush3.bf16.msra.mxu1 %v3980_v49  ;;  %v317_v49 = vld [vmem:[%s4298_s19 + $0x108] sm:$0xff]  ;;  %v311_v39 = vld [vmem:[%s4298_s19 + $0xd8] sm:$0xff] }
  0x86   : > { %1577 = vmatmul.mubr.bf16.gmra.mrb[28].mxu0 %v4535_v63  ;;  %3413 = vmatprep.subr.bf16.mxu1 %v3984_v50  ;;  %v364_v63 = vld [vmem:[%s4298_s19 + $0x280] sm:$0xff] }
  0x87   : > { %2080 = vmatmul.mubr.bf16.gmra.mrb[44].mxu1 %v4670_v52  ;;  %1616 = vmatpush1.bf16.msra.mxu0 %v3945_v51  ;;  %v4708_v3 = vpack.c.bf16 %v364_v63, %v357_v61  ;;  %v324_v50 = vld [vmem:[%s4298_s19 + $0x140] sm:$0xff]  ;;  %v3997_v51 = vld [vmem:[%s5349_s1 + $0x3f0] ss:$12 sps:$4 sm:$0xff]  }
  0x88   : > { %1617 = vmatprep.subr.bf16.mxu0 %v3950_v54  ;;  %1619 = vmatprep.mubr.bf16.mxu0 %v4540_v1  ;;  %v4703_v1 = vpack.c.bf16 %v349_v60, %v342_v59  ;;  %v4829_v54 = vpack.c.bf16 %v309_v48, %v302_v47  ;;  %v331_v59 = vld [vmem:[%s4298_s19 + $0x178] sm:$0xff]  ;;  %v338_v60 = vld [vmem:[%s4298_s19 + $0x1b0] sm:$0xff]  ;;  %v4003_v61 = vld [vmem:[%s5349_s1 + $0x420] ss:$12 sps:$4 sm:$0xff]  }
  0x89   : > { %2087 = vmatprep.mubr.bf16.mxu1 %v4675_v53  ;;  %3414 = vmatpush3.bf16.msra.mxu1 %v3985_v55  ;;  %v4834_v55 = vpack.c.bf16 %v324_v50, %v317_v49  ;;  %v4008_v63 = vld [vmem:[%s5349_s1 + $0x43c] ss:$12 sps:$4 sm:$0xff]   ;;  %v360_v50 = vld [vmem:[%s4298_s19 + $0x260] sm:$0xff] }
  0x8a   : > { %3415 = vmatprep.subr.bf16.mxu1 %v3989_v56  ;;  %v4005_v56 = vld [vmem:[%s5349_s1 + $0x424] ss:$12 sps:$4 sm:$0xff]   ;;  %v353_v47 = vld [vmem:[%s4298_s19 + $0x228] sm:$0xff] }
  0x8b   : > { %1618 = vmatpush1.bf16.msra.mxu0 %v3948_v57  ;;  %v316_v57 = vld [vmem:[%s4298_s19 + $0x100] sm:$0xff] }
  0x8c   : > { %1700 = vmatprep.subr.bf16.mxu0 %v3953_v58  ;;  %v323_v58 = vld [vmem:[%s4298_s19 + $0x138] sm:$0xff] }
  0x8d   : > { %3416 = vmatpush3.bf16.msra.mxu1 %v3990_v62  ;;  %v414_v62 = vpack.c.bf16 %v323_v58, %v316_v57  ;;  %v395_v57 = vld [vmem:[%s4298_s19 + $0x378] sm:$0xff] }
  0x8e   : > { %1620 = vmatmul.mubr.bf16.vlgmr.msra.gmra.mrb[0].mxu0 %v4562_v10  ;;  %v3961_v10 = vld [vmem:[%s5349_s1 + $0x330] ss:$12 sps:$4 sm:$0xff]  }
  0x8f   : > { %2088 = vmatmul.mubr.bf16.gmra.mrb[48].mxu1 %v4703_v1  ;;  %1701 = vmatpush1.bf16.msra.mxu0 %v3951_v0  ;;  %v422_v0 = vpack.c.bf16 %v338_v60, %v331_v59 }
  0x90   : > { %1702 = vmatprep.subr.bf16.mxu0 %v3958_v2  ;;  %1629 = vmatprep.mubr.bf16.mxu0 %v4570_v13  ;;  %v4732_v13 = vpack.c.bf16 %v378_v9, %v371_v8  ;;  %v4011_v2 = vld [vmem:[%s5349_s1 + $0x454] ss:$12 sps:$4 sm:$0xff]   ;;  %v4014_v9 = vld [vmem:[%s5349_s1 + $0x46c] ss:$12 sps:$4 sm:$0xff]  }
  0x91   : > { %2095 = vmatprep.mubr.bf16.mxu1 %v4708_v3 }
  0x93   : > { %1703 = vmatpush1.bf16.msra.mxu0 %v3956_v4  ;;  %v337_v4 = vld [vmem:[%s4298_s19 + $0x1a8] sm:$0xff] }
  0x94   : > { %1704 = vmatprep.subr.bf16.mxu0 %v3963_v5  ;;  %v345_v5 = vld [vmem:[%s4298_s19 + $0x1e8] sm:$0xff] }
  0x96   : > { %1630 = vmatmul.mubr.bf16.gmra.mrb[4].mxu0 %v4598_v24  ;;  %v4018_v24 = vld [vmem:[%s5349_s1 + $0x488] ss:$12 sps:$4 sm:$0xff]  }
  0x97   : > { %2096 = vmatmul.mubr.bf16.gmra.mrb[52].mxu1 %v4727_v11  ;;  %1705 = vmatpush1.bf16.msra.mxu0 %v3961_v10  ;;  %v429_v10 = vpack.c.bf16 %v352_v6, %v345_v5 }
  0x98   : > { %1706 = vmatprep.subr.bf16.mxu0 %v3968_v12  ;;  %1639 = vmatprep.mubr.bf16.mxu0 %v4606_v27  ;;  %v384_v27 = vld [vmem:[%s4298_s19 + $0x320] sm:$0xff] }
  0x99   : > { %2103 = vmatprep.mubr.bf16.mxu1 %v4732_v13  ;;  %3570 = vmatprep.subr.bf16.mxu1 %v4018_v24  ;;  %v4778_v32 = vpack.c.bf16 %v391_v28, %v384_v27  ;;  %v4017_v12 = vld [vmem:[%s5349_s1 + $0x484] ss:$12 sps:$4 sm:$0xff]   ;;  %v379_v27 = vld [vmem:[%s4298_s19 + $0x2f8] sm:$0xff] }
  0x9a   : > { %v387_v28 = vld [vmem:[%s4298_s19 + $0x338] sm:$0xff] }
  0x9b   : > { %1707 = vmatpush1.bf16.msra.mxu0 %v3966_v14  ;;  %v351_v14 = vld [vmem:[%s4298_s19 + $0x218] sm:$0xff] }
  0x9c   : > { %1708 = vmatprep.subr.bf16.mxu0 %v3973_v15  ;;  %v359_v15 = vld [vmem:[%s4298_s19 + $0x258] sm:$0xff] }
  0x9d   : > { %v436_v19 = vpack.c.bf16 %v366_v16, %v359_v15 }
  0x9e   : > { %1640 = vmatmul.mubr.bf16.gmra.mrb[8].mxu0 %v4634_v38  ;;  %v295_v38 = vld [vmem:[%s4298_s19 + $0x58] sm:$0xff] }
  0x9f   : > { %2104 = vmatmul.mubr.bf16.gmra.mrb[56].mxu1 %v4751_v21  ;;  %1709 = vmatpush1.bf16.msra.mxu0 %v3971_v20  ;;  %v4805_v43 = vpack.c.bf16 %v295_v38, %v288_v37  ;;  %v358_v20 = vld [vmem:[%s4298_s19 + $0x250] sm:$0xff]  ;;  %v304_v38 = vld [vmem:[%s4298_s19 + $0xa0] sm:$0xff] }
  0xa0   : > { %1710 = vmatprep.subr.bf16.mxu0 %v3978_v22  ;;  %1649 = vmatprep.mubr.bf16.mxu0 %v4642_v41  ;;  %v3991_v41 = vld [vmem:[%s5349_s1 + $0x3c0] ss:$12 sps:$4 sm:$0xff]  }
  0xa1   : > { %2111 = vmatprep.mubr.bf16.mxu1 %v4756_v23  ;;  %v373_v22 = vld [vmem:[%s4298_s19 + $0x2c8] sm:$0xff] }
  0xa3   : > { %1711 = vmatpush1.bf16.msra.mxu0 %v3976_v25 }
  0xa4   : > { %1712 = vmatprep.subr.bf16.mxu0 %v3983_v26  ;;  %v372_v26 = vld [vmem:[%s4298_s19 + $0x2c0] sm:$0xff] }
  0xa5   : > { %v442_v30 = vpack.c.bf16 %v379_v27, %v372_v26 }
  0xa6   : > { %1650 = vmatmul.mubr.bf16.gmra.mrb[12].mxu0 %v4670_v52  ;;  %v4002_v52 = vld [vmem:[%s5349_s1 + $0x40c] ss:$12 sps:$4 sm:$0xff]  }
  0xa7   : > { %2112 = vmatmul.mubr.bf16.gmra.mrb[60].mxu1 %v4778_v32  ;;  %1713 = vmatpush1.bf16.msra.mxu0 %v3981_v29  ;;  %v394_v29 = vld [vmem:[%s4298_s19 + $0x370] sm:$0xff] }
  0xa8   : > { %1714 = vmatprep.subr.bf16.mxu0 %v3988_v33  ;;  %1659 = vmatprep.mubr.bf16.mxu0 %v4675_v53  ;;  %v4000_v53 = vld [vmem:[%s5349_s1 + $0x408] ss:$12 sps:$4 sm:$0xff]   ;;  %v450_v31 = vpack.c.bf16 %v394_v29, %v387_v28  ;;  %v4019_v28 = vld [vmem:[%s5351_s3 + $0x80] sm:$0xff]  }
  0xa9   : > { %2152 = vmatprep.mubr.bf16.mxu1 %v4786_v35  ;;  %v393_v33 = vld [vmem:[%s4298_s19 + $0x368] sm:$0xff] }
  0xab   : > { %1715 = vmatpush1.bf16.msra.mxu0 %v3986_v34  ;;  %v290_v34 = vld [vmem:[%s4298_s19 + $0x30] sm:$0xff] }
  0xac   : > { %1716 = vmatprep.subr.bf16.mxu0 %v3993_v36 }
  0xae   : > { %1660 = vmatmul.mubr.bf16.gmra.mrb[16].mxu0 %v4703_v1  ;;  %v4006_v1 = vld [vmem:[%s5349_s1 + $0x438] ss:$12 sps:$4 sm:$0xff]  }
  0xaf   : > { %2153 = vmatmul.mubr.bf16.vlgmr.msra.gmra.mrb[64].mxu1 %v4805_v43  ;;  %1717 = vmatpush1.bf16.msra.mxu0 %v3991_v41  ;;  %v325_v41 = vld [vmem:[%s4298_s19 + $0x148] sm:$0xff] }
  0xb0   : > { %1718 = vmatprep.subr.bf16.mxu0 %v3996_v42  ;;  %1669 = vmatprep.mubr.bf16.mxu0 %v4708_v3  ;;  %v330_v3 = vld [vmem:[%s4298_s19 + $0x170] sm:$0xff]  ;;  %v409_v42 = vpack.c.bf16 %v311_v39, %v304_v38 }
  0xb1   : > { %2160 = vmatprep.mubr.bf16.mxu1 %v4810_v45  ;;  %3571 = vmatpush3.bf16.msra.mxu1 %v4018_v24  ;;  %v421_v8 = vpack.c.bf16 %v337_v4, %v330_v3 }
  0xb3   : > { %1719 = vmatpush1.bf16.msra.mxu0 %v3994_v44  ;;  %v332_v44 = vld [vmem:[%s4298_s19 + $0x180] sm:$0xff] }
  0xb4   : > { %1720 = vmatprep.subr.bf16.mxu0 %v3999_v46  ;;  %v346_v46 = vld [vmem:[%s4298_s19 + $0x1f0] sm:$0xff] }
  0xb5   : > { %v4913_v49 = vpack.c.bf16 %v353_v47, %v346_v46  ;;  %v4997_v46 = vld [vmem:[%s5350_s2] sm:$0x7] }
  0xb6   : > { %1670 = vmatmul.mubr.bf16.gmra.mrb[20].mxu0 %v4727_v11  ;;  %v4012_v11 = vld [vmem:[%s5349_s1 + $0x468] ss:$12 sps:$4 sm:$0xff]  }
  0xb7   : > { %2161 = vmatmul.mubr.bf16.gmra.mrb[68].mxu1 %v4829_v54  ;;  %1721 = vmatpush1.bf16.msra.mxu0 %v3997_v51  ;;  %v367_v51 = vld [vmem:[%s4298_s19 + $0x298] sm:$0xff] }
  0xb8   : > { %1722 = vmatprep.subr.bf16.mxu0 %v4002_v52  ;;  %1679 = vmatprep.mubr.bf16.mxu0 %v4732_v13  ;;  %v344_v13 = vld [vmem:[%s4298_s19 + $0x1e0] sm:$0xff]  ;;  %v374_v52 = vld [vmem:[%s4298_s19 + $0x2d0] sm:$0xff] }
  0xb9   : > { %2168 = vmatprep.mubr.bf16.mxu1 %v4834_v55  ;;  %v428_v18 = vpack.c.bf16 %v351_v14, %v344_v13 }
  0xbb   : > { %1723 = vmatpush1.bf16.msra.mxu0 %v4000_v53  ;;  %v4922_v53 = vpack.c.bf16 %v367_v51, %v360_v50 }
  0xbc   : > { %1724 = vmatprep.subr.bf16.mxu0 %v4005_v56  ;;  %v388_v56 = vld [vmem:[%s4298_s19 + $0x340] sm:$0xff] }
  0xbd   : > { %v4932_v59 = vpack.c.bf16 %v395_v57, %v388_v56 }
  0xbe   : > { %1680 = vmatmul.mubr.bf16.gmra.mrb[24].mxu0 %v4751_v21  ;;  %v365_v21 = vld [vmem:[%s4298_s19 + $0x288] sm:$0xff] }
  0xbf   : > { %2169 = vmatmul.mubr.bf16.gmra.mrb[72].mxu1 %v414_v62  ;;  %1725 = vmatpush1.bf16.msra.mxu0 %v4003_v61  ;;  %v435_v24 = vpack.c.bf16 %v365_v21, %v358_v20 }
  0xc0   : > { %1726 = vmatprep.subr.bf16.mxu0 %v4008_v63  ;;  %1689 = vmatprep.mubr.bf16.mxu0 %v4756_v23  ;;  %v380_v23 = vld [vmem:[%s4298_s19 + $0x300] sm:$0xff] }
  0xc1   : > { %2176 = vmatprep.mubr.bf16.mxu1 %v422_v0  ;;  %v443_v25 = vpack.c.bf16 %v380_v23, %v373_v22 }
  0xc3   : > { %1727 = vmatpush1.bf16.msra.mxu0 %v4006_v1  ;;  %v4115_v1 = vmov 0  }
  0xc4   : > { %1728 = vmatprep.subr.bf16.mxu0 %v4011_v2 }
  0xc6   : > { %1690 = vmatmul.mubr.bf16.gmra.mrb[28].mxu0 %v4778_v32  ;;  %v386_v32 = vld [vmem:[%s4298_s19 + $0x330] sm:$0xff] }
  0xc7   : > { %2177 = vmatmul.mubr.bf16.gmra.mrb[76].mxu1 %v421_v8  ;;  %1729 = vmatpush1.bf16.msra.mxu0 %v4009_v7  ;;  %v449_v36 = vpack.c.bf16 %v393_v33, %v386_v32  ;;  %v4020_v33 = vld [vmem:[%s5351_s3 + $0x88] sm:$0xff]  }
  0xc8   : > { %1730 = vmatprep.subr.bf16.mxu0 %v4014_v9  ;;  %1732 = vmatprep.mubr.bf16.mxu0 %v4786_v35  ;;  %v297_v35 = vld [vmem:[%s4298_s19 + $0x68] sm:$0xff] }
  0xc9   : > { %2184 = vmatprep.mubr.bf16.mxu1 %v429_v10  ;;  %v402_v37 = vpack.c.bf16 %v297_v35, %v290_v34  ;;  %v650_v34 = vlaneseq }
  0xcb   : > { %1731 = vmatpush1.bf16.msra.mxu0 %v4012_v11 }
  0xcc   : > { %1813 = vmatprep.subr.bf16.mxu0 %v4017_v12 }
  0xce   : > { %1733 = vmatmul.mubr.bf16.vlgmr.msra.gmra.mrb[0].mxu0 %v4805_v43  ;;  %v416_v43 = vpack.c.bf16 %v325_v41, %v318_v40  ;;  %v4983_v41 = vshrl.u32 %v650_v34, 7 }
  0xcf   : > { %2185 = vmatmul.mubr.bf16.gmra.mrb[80].mxu1 %v428_v18  ;;  %1814 = vmatpush1.bf16.msra.mxu0 %v4015_v17 }
  0xd0   : > { %1742 = vmatprep.mubr.bf16.mxu0 %v4810_v45  ;;  %2192 = vmatprep.mubr.bf16.mxu1 %v436_v19  ;;  %v339_v45 = vld [vmem:[%s4298_s19 + $0x1b8] sm:$0xff] }
  0xd1   : > { %v423_v48 = vpack.c.bf16 %v339_v45, %v332_v44  ;;  %3588 = vmatprep.subr.bf16.mxu0 %v4019_v28  ;;  %v660_v44 = vsub.s32 2, %v4983_v41 }
  0xd6   : > { %1743 = vmatmul.mubr.bf16.gmra.mrb[4].mxu0 %v4829_v54  ;;  %v381_v54 = vld [vmem:[%s4298_s19 + $0x308] sm:$0xff] }
  0xd7   : > { %2193 = vmatmul.mubr.bf16.gmra.mrb[84].mxu1 %v435_v24  ;;  %1752 = vmatprep.mubr.bf16.mxu0 %v4834_v55  ;;  %v4924_v55 = vpack.c.bf16 %v381_v54, %v374_v52  ;;  %v5005_v52 = vrot.slane %v4997_v46, %v660_v44 }
  0xd8   : > { %2200 = vmatprep.mubr.bf16.mxu1 %v443_v25 }
  0xde   : > { %1753 = vmatmul.mubr.bf16.gmra.mrb[8].mxu0 %v414_v62 }
  0xdf   : > { %2201 = vmatmul.mubr.bf16.gmra.mrb[88].mxu1 %v442_v30  ;;  %1762 = vmatprep.mubr.bf16.mxu0 %v422_v0 }
  0xe0   : > { %2208 = vmatprep.mubr.bf16.mxu1 %v450_v31 }
  0xe6   : > { %1763 = vmatmul.mubr.bf16.gmra.mrb[12].mxu0 %v421_v8 }
  0xe7   : > { %2209 = vmatmul.mubr.bf16.gmra.mrb[92].mxu1 %v449_v36  ;;  %1772 = vmatprep.mubr.bf16.mxu0 %v429_v10 }
  0xe8   : > { %3572 = vmatprep.mubr.msk.bf16.mxu1 %vm1449_vm0, %v402_v37 }
  0xee   : > { %1773 = vmatmul.mubr.bf16.gmra.mrb[16].mxu0 %v428_v18 }
  0xef   : > { %3573 = vmatmul.mubr.msk.bf16.vlgmr.msra.gmra.mrb[96].mxu1 %vm1449_vm0, %v409_v42  ;;  %1782 = vmatprep.mubr.bf16.mxu0 %v436_v19 }
  0xf0   : > { %3576 = vmatprep.mubr.msk.bf16.mxu1 %vm1449_vm0, %v416_v43 }
  0xf6   : > { %1783 = vmatmul.mubr.bf16.gmra.mrb[20].mxu0 %v435_v24 }
  0xf7   : > { %3577 = vmatmul.mubr.msk.bf16.gmra.mrb[100].mxu1 %vm1449_vm0, %v423_v48  ;;  %1792 = vmatprep.mubr.bf16.mxu0 %v443_v25 }
  0xf8   : > { %3580 = vmatprep.mubr.msk.bf16.mxu1 %vm1449_vm0, %v4913_v49 }
  0xfe   : > { %1793 = vmatmul.mubr.bf16.gmra.mrb[24].mxu0 %v442_v30 }
  0xff   : > { %3581 = vmatmul.mubr.msk.bf16.gmra.mrb[104].mxu1 %vm1449_vm0, %v4922_v53  ;;  %1802 = vmatprep.mubr.bf16.mxu0 %v450_v31 }
 0x100   : > { %3584 = vmatprep.mubr.msk.bf16.mxu1 %vm1449_vm0, %v4924_v55 }
 0x101   : > { %v3289_v58 = vpop.f32.mrb[0].mxu1 }
 0x102   : > { %v3290_v60 = vpop.f32.mrb[1].mxu1 }
 0x103   : > { %v4934_v61 = vadd.f32 %v3290_v60, %v3289_v58  ;;  %v3292_v62 = vpop.f32.mrb[2].mxu1 }
 0x104   : > { %v3293_v63 = vpop.f32.mrb[3].mxu1 }
 0x105   : > { %v4936_v0 = vadd.f32 %v3293_v63, %v3292_v62  ;;  %v1961_v56 = vadd.f32 %v4934_v61, %v5005_v52 }
 0x106   : > { %1803 = vmatmul.mubr.bf16.gmra.mrb[28].mxu0 %v449_v36 }
 0x107   : > { %3585 = vmatmul.mubr.msk.bf16.gmra.mrb[108].mxu1 %vm1449_vm0, %v4932_v59  ;;  %1845 = vmatprep.mubr.bf16.mxu0 %v4115_v1  ;;  %v1964_v60 = vadd.f32 %v4936_v0, %v5005_v52 }
 0x109   : > { %v3295_v2 = vpop.f32.mrb[4].mxu1 }
 0x10a   : > { %v3296_v3 = vpop.f32.mrb[5].mxu1 }
 0x10b   : > { %v4941_v4 = vadd.f32 %v3296_v3, %v3295_v2  ;;  %v3298_v5 = vpop.f32.mrb[6].mxu1  ;;  %v4026_v3 = vld [vmem:[%s5351_s3 + $0xb8] sm:$0xff]  }
 0x10c   : > { %v3299_v6 = vpop.f32.mrb[7].mxu1 }
 0x10d   : > { %v4944_v7 = vadd.f32 %v3299_v6, %v3298_v5  ;;  %v1969_v0 = vadd.f32 %v4941_v4, %v5005_v52 }
 0x10e   : > { %3217 = vmatmul.mubr.msk.bf16.vlgmr.msra.gmra.mrb[0].mxu0 %vm1449_vm0, %v402_v37  ;;  %v4021_v37 = vld [vmem:[%s5351_s3 + $0x90] sm:$0xff]  }
 0x10f   : > { %1855 = vmatprep.mubr.bf16.mxu0 %v4115_v1  ;;  %3589 = vmatpush3.bf16.msra.mxu0 %v4019_v28 }
 0x110   : > { %3590 = vmatprep.subr.bf16.mxu0 %v4020_v33 }
 0x111   : > { %v3301_v8 = vpop.f32.mrb[8].mxu1 }
 0x112   : > { %v3302_v9 = vpop.f32.mrb[9].mxu1 }
 0x113   : > { %v4947_v10 = vadd.f32 %v3302_v9, %v3301_v8  ;;  %v3304_v11 = vpop.f32.mrb[10].mxu1  ;;  %3591 = vmatpush3.bf16.msra.mxu0 %v4020_v33  ;;  %v4027_v9 = vld [vmem:[%s5351_s3 + $0x40] sm:$0xff]  }
 0x114   : > { %v3305_v12 = vpop.f32.mrb[11].mxu1  ;;  %3592 = vmatprep.subr.bf16.mxu0 %v4021_v37  ;;  %3474 = vmatprep.subr.bf16.mxu1 %v4027_v9 }
 0x115   : > { %v4950_v13 = vadd.f32 %v3305_v12, %v3304_v11 }
 0x116   : > { %3218 = vmatmul.mubr.msk.bf16.gmra.mrb[4].mxu0 %vm1449_vm0, %v409_v42 }
 0x117   : > { %1865 = vmatprep.mubr.bf16.mxu0 %v4115_v1  ;;  %3593 = vmatpush3.bf16.msra.mxu0 %v4021_v37 }
 0x119   : > { %v3307_v14 = vpop.f32.mrb[12].mxu1 }
 0x11a   : > { %v3308_v15 = vpop.f32.mrb[13].mxu1 }
 0x11b   : > { %v4953_v16 = vadd.f32 %v3308_v15, %v3307_v14  ;;  %v3310_v17 = vpop.f32.mrb[14].mxu1  ;;  %v4028_v14 = vld [vmem:[%s5351_s3] sm:$0xff]  }
 0x11c   : > { %v3311_v18 = vpop.f32.mrb[15].mxu1  ;;  %3475 = vmatpush3.bf16.msra.mxu1 %v4028_v14 }
 0x11d   : > { %v4956_v19 = vadd.f32 %v3311_v18, %v3310_v17  ;;  %v4029_v18 = vld [vmem:[%s5351_s3 + $0x48] sm:$0xff]   ;;  %v1985_v37 = vadd.f32 %v4953_v16, %v5005_v52 }
 0x11e   : > { %3219 = vmatmul.mubr.msk.bf16.gmra.mrb[8].mxu0 %vm1449_vm0, %v416_v43  ;;  %v4022_v43 = vld [vmem:[%s5351_s3 + $0x98] sm:$0xff]   ;;  %3476 = vmatprep.subr.bf16.mxu1 %v4029_v18 }
 0x11f   : > { %1875 = vmatprep.mubr.bf16.mxu0 %v4115_v1  ;;  %3594 = vmatprep.subr.bf16.mxu0 %v4022_v43  ;;  %v1988_v44 = vadd.f32 %v4956_v19, %v5005_v52  ;;  %v4038_v19 = vld [vmem:[%s5351_s3 + $0x28] sm:$0xff]  }
 0x120   : > { %3595 = vmatpush3.bf16.msra.mxu0 %v4022_v43  ;;  %v4035_v43 = vld [vmem:[%s5351_s3 + $0x60] sm:$0xff]  }
 0x121   : > { %v3313_v20 = vpop.f32.mrb[16].mxu1 }
 0x122   : > { %v3314_v21 = vpop.f32.mrb[17].mxu1 }
 0x123   : > { %v4959_v22 = vadd.f32 %v3314_v21, %v3313_v20  ;;  %v3316_v23 = vpop.f32.mrb[18].mxu1  ;;  %v1977_v21 = vadd.f32 %v4947_v10, %v5005_v52 }
 0x124   : > { %v3317_v24 = vpop.f32.mrb[19].mxu1 }
 0x125   : > { %v4962_v25 = vadd.f32 %v3317_v24, %v3316_v23 }
 0x126   : > { %3220 = vmatmul.mubr.msk.bf16.gmra.mrb[12].mxu0 %vm1449_vm0, %v423_v48  ;;  %v4023_v48 = vld [vmem:[%s5351_s3 + $0xa0] sm:$0xff]  }
 0x127   : > { %1885 = vmatprep.mubr.bf16.mxu0 %v4115_v1  ;;  %3596 = vmatprep.subr.bf16.mxu0 %v4023_v48 }
 0x128   : > { %3597 = vmatpush3.bf16.msra.mxu0 %v4023_v48  ;;  %v4036_v48 = vld [vmem:[%s5351_s3 + $0x20] sm:$0xff]  }
 0x129   : > { %v3319_v26 = vpop.f32.mrb[20].mxu1 }
 0x12a   : > { %v3320_v27 = vpop.f32.mrb[21].mxu1 }
 0x12b   : > { %v4968_v29 = vadd.f32 %v3320_v27, %v3319_v26  ;;  %v3322_v30 = vpop.f32.mrb[22].mxu1  ;;  %v4031_v26 = vld [vmem:[%s5351_s3 + $0x50] sm:$0xff]   ;;  %v1980_v27 = vadd.f32 %v4950_v13, %v5005_v52  ;;  %v4034_v13 = vld [vmem:[%s5351_s3 + $0x18] sm:$0xff]  }
 0x12c   : > { %v3323_v31 = vpop.f32.mrb[23].mxu1 }
 0x12d   : > { %v4972_v32 = vadd.f32 %v3323_v31, %v3322_v30  ;;  %v4032_v31 = vld [vmem:[%s5351_s3 + $0x10] sm:$0xff]   ;;  %v2001_v9 = vadd.f32 %v4968_v29, %v5005_v52 }
 0x12e   : > { %3221 = vmatmul.mubr.msk.bf16.gmra.mrb[16].mxu0 %vm1449_vm0, %v4913_v49 }
 0x12f   : > { %1895 = vmatprep.mubr.bf16.mxu0 %v4115_v1 }
 0x131   : > { %v3325_v35 = vpop.f32.mrb[24].mxu1 }
 0x132   : > { %v3326_v36 = vpop.f32.mrb[25].mxu1 }
 0x133   : > { %v4981_v38 = vadd.f32 %v3326_v36, %v3325_v35  ;;  %v3328_v39 = vpop.f32.mrb[26].mxu1  ;;  %v4033_v35 = vld [vmem:[%s5351_s3 + $0x58] sm:$0xff]  }
 0x134   : > { %v3329_v40 = vpop.f32.mrb[27].mxu1 }
 0x135   : > { %v4987_v42 = vadd.f32 %v3329_v40, %v3328_v39 }
 0x136   : > { %3222 = vmatmul.mubr.msk.bf16.gmra.mrb[20].mxu0 %vm1449_vm0, %v4922_v53  ;;  %v4024_v53 = vld [vmem:[%s5351_s3 + $0xa8] sm:$0xff]  }
 0x137   : > { %1905 = vmatprep.mubr.bf16.mxu0 %v4115_v1  ;;  %3598 = vmatprep.subr.bf16.mxu0 %v4024_v53  ;;  %v2012_v29 = vadd.f32 %v4987_v42, %v5005_v52 }
 0x138   : > { %3599 = vmatpush3.bf16.msra.mxu0 %v4024_v53  ;;  %v4037_v53 = vld [vmem:[%s5351_s3 + $0x68] sm:$0xff]  }
 0x139   : > { %v3331_v45 = vpop.f32.mrb[28].mxu1 }
 0x13a   : > { %v3332_v47 = vpop.f32.mrb[29].mxu1 }
 0x13b   : > { %v5002_v49 = vadd.f32 %v3332_v47, %v3331_v45  ;;  %v3334_v50 = vpop.f32.mrb[30].mxu1 }
 0x13c   : > { %v3335_v51 = vpop.f32.mrb[31].mxu1 }
 0x13d   : > { %v5009_v54 = vadd.f32 %v3335_v51, %v3334_v50 }
 0x13e   : > { %3223 = vmatmul.mubr.msk.bf16.gmra.mrb[24].mxu0 %vm1449_vm0, %v4924_v55  ;;  %v4025_v55 = vld [vmem:[%s5351_s3 + $0xb0] sm:$0xff]  }
 0x13f   : > { %1915 = vmatprep.mubr.bf16.mxu0 %v4115_v1  ;;  %3600 = vmatprep.subr.bf16.mxu0 %v4025_v55 }
 0x140   : > { %3601 = vmatpush3.bf16.msra.mxu0 %v4025_v55 }
 0x141   : > { %v3353_v57 = vpop.f32.mrb[32].mxu1  ;;  %3602 = vmatprep.subr.bf16.mxu0 %v4026_v3 }
 0x142   : > { %v3354_v58 = vpop.f32.mrb[33].mxu1 }
 0x143   : > { %v3355_v62 = vadd.f32 %v3354_v58, %v3353_v57  ;;  %v3356_v63 = vpop.f32.mrb[34].mxu1  ;;  %v1993_v57 = vadd.f32 %v4959_v22, %v5005_v52 }
 0x144   : > { %v3357_v2 = vpop.f32.mrb[35].mxu1  ;;  %3603 = vmatpush3.bf16.msra.mxu0 %v4026_v3 }
 0x145   : > { %v5022_v1 = vadd.f32 %v3355_v62, %v1961_v56  ;;  %v3358_v61 = vadd.f32 %v3357_v2, %v3356_v63  ;;  %v1996_v62 = vadd.f32 %v4962_v25, %v5005_v52  ;;  %v4042_v25 = vld [vmem:[%s5351_s3 + $0x38] sm:$0xff]  }
 0x146   : > { %3224 = vmatmul.mubr.msk.bf16.gmra.mrb[28].mxu0 %vm1449_vm0, %v4932_v59  ;;  %v1972_v59 = vadd.f32 %v4944_v7, %v5005_v52  ;;  %v4030_v7 = vld [vmem:[%s5351_s3 + $0x8] sm:$0xff]  }
 0x147   : > { %v5029_v5 = vadd.f32 %v3358_v61, %v1964_v60  ;;  %3477 = vmatpush3.bf16.msra.mxu1 %v4030_v7  ;;  %v4039_v60 = vld [vmem:[%s5351_s3 + $0x70] sm:$0xff]  }
 0x148   : > { %3478 = vmatprep.subr.bf16.mxu1 %v4031_v26  ;;  %v4040_v61 = vld [vmem:[%s5351_s3 + $0x30] sm:$0xff]  }
 0x14a   : > { %v3359_v6 = vpop.f32.mrb[36].mxu1 }
 0x14b   : > { %v3360_v8 = vpop.f32.mrb[37].mxu1  ;;  %3479 = vmatpush3.bf16.msra.mxu1 %v4032_v31 }
 0x14c   : > { %v3361_v11 = vadd.f32 %v3360_v8, %v3359_v6  ;;  %v3362_v12 = vpop.f32.mrb[38].mxu1  ;;  %3480 = vmatprep.subr.bf16.mxu1 %v4033_v35  ;;  %v4041_v6 = vld [vmem:[%s5351_s3 + $0x78] sm:$0xff]  }
 0x14d   : > { %v3363_v15 = vpop.f32.mrb[39].mxu1 }
 0x14e   : > { %v5041_v17 = vadd.f32 %v3361_v11, %v1969_v0  ;;  %v3364_v4 = vadd.f32 %v3363_v15, %v3362_v12  ;;  %v2004_v12 = vadd.f32 %v4972_v32, %v5005_v52 }
 0x14f   : > { %3481 = vmatpush3.bf16.msra.mxu1 %v4034_v13 }
 0x150   : > { %v5046_v20 = vadd.f32 %v3364_v4, %v1972_v59  ;;  %3482 = vmatprep.subr.bf16.mxu1 %v4035_v43 }
 0x152   : > { %v3365_v23 = vpop.f32.mrb[40].mxu1 }
 0x153   : > { %v3366_v24 = vpop.f32.mrb[41].mxu1  ;;  %3483 = vmatpush3.bf16.msra.mxu1 %v4036_v48 }
 0x154   : > { %v3367_v28 = vadd.f32 %v3366_v24, %v3365_v23  ;;  %v3368_v30 = vpop.f32.mrb[42].mxu1  ;;  %3484 = vmatprep.subr.bf16.mxu1 %v4037_v53  ;;  %v2009_v23 = vadd.f32 %v4981_v38, %v5005_v52  ;;  %v2020_v38 = vadd.f32 %v5009_v54, %v5005_v52 }
 0x155   : > { %v3369_v33 = vpop.f32.mrb[43].mxu1 }
 0x156   : > { %v5061_v34 = vadd.f32 %v3367_v28, %v1977_v21  ;;  %v3370_v10 = vadd.f32 %v3369_v33, %v3368_v30 }
 0x157   : > { %3485 = vmatpush3.bf16.msra.mxu1 %v4038_v19 }
 0x158   : > { %v5066_v36 = vadd.f32 %v3370_v10, %v1980_v27  ;;  %3486 = vmatprep.subr.bf16.mxu1 %v4039_v60  ;;  %v2017_v10 = vadd.f32 %v5002_v49, %v5005_v52 }
 0x15a   : > { %v3371_v39 = vpop.f32.mrb[44].mxu1 }
 0x15b   : > { %v3372_v40 = vpop.f32.mrb[45].mxu1  ;;  %3487 = vmatpush3.bf16.msra.mxu1 %v4040_v61 }
 0x15c   : > { %v3373_v45 = vadd.f32 %v3372_v40, %v3371_v39  ;;  %v3374_v47 = vpop.f32.mrb[46].mxu1  ;;  %3488 = vmatprep.subr.bf16.mxu1 %v4041_v6 }
 0x15d   : > { %v3375_v50 = vpop.f32.mrb[47].mxu1 }
 0x15e   : > { %v5081_v51 = vadd.f32 %v3373_v45, %v1985_v37  ;;  %v3376_v16 = vadd.f32 %v3375_v50, %v3374_v47 }
 0x15f   : > { %3489 = vmatpush3.bf16.msra.mxu1 %v4042_v25 }
 0x160   : > { %v5086_v56 = vadd.f32 %v3376_v16, %v1988_v44 }
 0x162   : > { %v3377_v58 = vpop.f32.mrb[48].mxu1 }
 0x163   : > { %v3378_v55 = vpop.f32.mrb[49].mxu1 }
 0x164   : > { %v3379_v63 = vadd.f32 %v3378_v55, %v3377_v58  ;;  %v3380_v2 = vpop.f32.mrb[50].mxu1 }
 0x165   : > { %v3381_v3 = vpop.f32.mrb[51].mxu1 }
 0x166   : > { %v5101_v0 = vadd.f32 %v3379_v63, %v1993_v57  ;;  %v3382_v22 = vadd.f32 %v3381_v3, %v3380_v2 }
 0x168   : > { %v5106_v8 = vadd.f32 %v3382_v22, %v1996_v62 }
 0x16a   : > { %v3383_v59 = vpop.f32.mrb[52].mxu1 }
 0x16b   : > { %v3384_v11 = vpop.f32.mrb[53].mxu1 }
 0x16c   : > { %v3385_v14 = vadd.f32 %v3384_v11, %v3383_v59  ;;  %v3386_v15 = vpop.f32.mrb[54].mxu1 }
 0x16d   : > { %v3387_v4 = vpop.f32.mrb[55].mxu1 }
 0x16e   : > { %v5115_v18 = vadd.f32 %v3385_v14, %v2001_v9  ;;  %v3388_v7 = vadd.f32 %v3387_v4, %v3386_v15 }
 0x170   : > { %v5117_v21 = vadd.f32 %v3388_v7, %v2004_v12 }
 0x172   : > { %v3389_v24 = vpop.f32.mrb[56].mxu1 }
 0x173   : > { %v3390_v26 = vpop.f32.mrb[57].mxu1 }
 0x174   : > { %v3391_v27 = vadd.f32 %v3390_v26, %v3389_v24  ;;  %v3392_v28 = vpop.f32.mrb[58].mxu1 }
 0x175   : > { %v3393_v30 = vpop.f32.mrb[59].mxu1 }
 0x176   : > { %v5123_v32 = vadd.f32 %v3391_v27, %v2009_v23  ;;  %v3394_v31 = vadd.f32 %v3393_v30, %v3392_v28 }
 0x178   : > { %v5125_v33 = vadd.f32 %v3394_v31, %v2012_v29 }
 0x17a   : > { %v3395_v35 = vpop.f32.mrb[60].mxu1 }
 0x17b   : > { %v3396_v13 = vpop.f32.mrb[61].mxu1 }
 0x17c   : > { %v3397_v37 = vadd.f32 %v3396_v13, %v3395_v35  ;;  %v3398_v39 = vpop.f32.mrb[62].mxu1 }
 0x17d   : > { %v3399_v40 = vpop.f32.mrb[63].mxu1 }
 0x17e   : > { %v5131_v42 = vadd.f32 %v3397_v37, %v2017_v10  ;;  %v3400_v43 = vadd.f32 %v3399_v40, %v3398_v39 }
 0x180   : > { %v5133_v44 = vadd.f32 %v3400_v43, %v2020_v38 }
 0x182   : > { %v3417_v45 = vpop.f32.mrb[64].mxu1 }
 0x183   : > { %v3418_v47 = vpop.f32.mrb[65].mxu1 }
 0x184   : > { %v3419_v48 = vadd.f32 %v3418_v47, %v3417_v45  ;;  %v3420_v50 = vpop.f32.mrb[66].mxu1 }
 0x185   : > { %v3421_v16 = vpop.f32.mrb[67].mxu1 }
 0x186   : > { %v3422_v53 = vadd.f32 %v3421_v16, %v3420_v50  ;;  %v2155_v49 = vadd.f32 %v3419_v48, %v5022_v1 }
 0x188   : > { %v5137_v19 = vadd.f32 %v3422_v53, %v5029_v5 }
 0x18a   : > { %v3423_v52 = vpop.f32.mrb[68].mxu1 }
 0x18b   : > { %v3424_v54 = vpop.f32.mrb[69].mxu1 }
 0x18c   : > { %v3425_v57 = vadd.f32 %v3424_v54, %v3423_v52  ;;  %v3426_v58 = vpop.f32.mrb[70].mxu1 }
 0x18d   : > { %v3427_v55 = vpop.f32.mrb[71].mxu1 }
 0x18e   : > { %v3428_v60 = vadd.f32 %v3427_v55, %v3426_v58  ;;  %v2163_v62 = vadd.f32 %v3425_v57, %v5041_v17 }
 0x190   : > { %v2166_v63 = vadd.f32 %v3428_v60, %v5046_v20 }
 0x192   : > { %v3429_v2 = vpop.f32.mrb[72].mxu1 }
 0x193   : > { %v3430_v61 = vpop.f32.mrb[73].mxu1 }
 0x194   : > { %v3431_v3 = vadd.f32 %v3430_v61, %v3429_v2  ;;  %v3432_v22 = vpop.f32.mrb[74].mxu1 }
 0x195   : > { %v3433_v6 = vpop.f32.mrb[75].mxu1 }
 0x196   : > { %v3434_v25 = vadd.f32 %v3433_v6, %v3432_v22  ;;  %v2171_v1 = vadd.f32 %v3431_v3, %v5061_v34 }
 0x198   : > { %v5143_v5 = vadd.f32 %v3434_v25, %v5066_v36 }
 0x19a   : > { %v3435_v9 = vpop.f32.mrb[76].mxu1 }
 0x19b   : > { %v3436_v59 = vpop.f32.mrb[77].mxu1 }
 0x19c   : > { %v3437_v11 = vadd.f32 %v3436_v59, %v3435_v9  ;;  %v3438_v12 = vpop.f32.mrb[78].mxu1 }
 0x19d   : > { %v3439_v14 = vpop.f32.mrb[79].mxu1 }
 0x19e   : > { %v3440_v15 = vadd.f32 %v3439_v14, %v3438_v12  ;;  %v2179_v17 = vadd.f32 %v3437_v11, %v5081_v51 }
 0x1a0   : > { %v2182_v20 = vadd.f32 %v3440_v15, %v5086_v56 }
 0x1a2   : > { %v3441_v4 = vpop.f32.mrb[80].mxu1 }
 0x1a3   : > { %v3442_v7 = vpop.f32.mrb[81].mxu1 }
 0x1a4   : > { %v3443_v23 = vadd.f32 %v3442_v7, %v3441_v4  ;;  %v3444_v24 = vpop.f32.mrb[82].mxu1 }
 0x1a5   : > { %v3445_v26 = vpop.f32.mrb[83].mxu1 }
 0x1a6   : > { %v3446_v29 = vadd.f32 %v3445_v26, %v3444_v24  ;;  %v2187_v34 = vadd.f32 %v3443_v23, %v5101_v0 }
 0x1a8   : > { %v5149_v36 = vadd.f32 %v3446_v29, %v5106_v8 }
 0x1aa   : > { %v3447_v27 = vpop.f32.mrb[84].mxu1 }
 0x1ab   : > { %v3448_v28 = vpop.f32.mrb[85].mxu1 }
 0x1ac   : > { %v3449_v30 = vadd.f32 %v3448_v28, %v3447_v27  ;;  %v3450_v31 = vpop.f32.mrb[86].mxu1 }
 0x1ad   : > { %v3451_v10 = vpop.f32.mrb[87].mxu1 }
 0x1ae   : > { %v3452_v35 = vadd.f32 %v3451_v10, %v3450_v31  ;;  %v2195_v51 = vadd.f32 %v3449_v30, %v5115_v18 }
 0x1b0   : > { %v2198_v56 = vadd.f32 %v3452_v35, %v5117_v21 }
 0x1b2   : > { %v3453_v13 = vpop.f32.mrb[88].mxu1 }
 0x1b3   : > { %v3454_v38 = vpop.f32.mrb[89].mxu1 }
 0x1b4   : > { %v3455_v37 = vadd.f32 %v3454_v38, %v3453_v13  ;;  %v3456_v39 = vpop.f32.mrb[90].mxu1  ;;  %v652_v38 = vsub.s32 0, %v4983_v41 }
 0x1b5   : > { %v3457_v40 = vpop.f32.mrb[91].mxu1 }
 0x1b6   : > { %v3458_v43 = vadd.f32 %v3457_v40, %v3456_v39  ;;  %v2203_v0 = vadd.f32 %v3455_v37, %v5123_v32 }
 0x1b8   : > { %v5155_v8 = vadd.f32 %v3458_v43, %v5125_v33 }
 0x1ba   : > { %v3459_v45 = vpop.f32.mrb[92].mxu1 }
 0x1bb   : > { %v3460_v47 = vpop.f32.mrb[93].mxu1 }
 0x1bc   : > { %v3461_v48 = vadd.f32 %v3460_v47, %v3459_v45  ;;  %v3462_v50 = vpop.f32.mrb[94].mxu1  ;;  %v5166_v45 = vrot.slane %v4997_v46, %v652_v38 }
 0x1bd   : > { %v3463_v16 = vpop.f32.mrb[95].mxu1 }
 0x1be   : > { %v3464_v53 = vadd.f32 %v3463_v16, %v3462_v50  ;;  %v2211_v18 = vadd.f32 %v3461_v48, %v5131_v42 }
 0x1c0   : > { %v2214_v21 = vadd.f32 %v3464_v53, %v5133_v44 }
 0x1c2   : > { %v3574_v52 = vpop.f32.mrb[96].mxu1 }
 0x1c3   : > { %v2260_v54 = vadd.f32 %v3574_v52, %v2163_v62  ;;  %v2251_v57 = vpop.f32.mrb[97].mxu1 }
 0x1c4   : > { %v2252_v58 = vadd.f32 %v2251_v57, %v2155_v49  ;;  %v3575_v55 = vpop.f32.mrb[98].mxu1 }
 0x1c5   : > { %v2263_v60 = vadd.f32 %v3575_v55, %v2166_v63  ;;  %v2254_v32 = vpop.f32.mrb[99].mxu1  ;;  %v2322_v2 = vmax.f32 %v2260_v54, 0.0 }
 0x1c6   : > { %v2255_v33 = vadd.f32 %v2254_v32, %v5137_v19  ;;  %v2316_v3 = vmax.f32 %v2252_v58, 0.0 }
 0x1c7   : > { %v2325_v61 = vmax.f32 %v2263_v60, 0.0 }
 0x1c8   : > { %v2319_v22 = vmax.f32 %v2255_v33, 0.0 }
 0x1c9   : > { %v2367_v6 = vpack.c.bf16 %v2325_v61, %v2322_v2 }
 0x1ca   : > { %v2364_v25 = vpack.c.bf16 %v2319_v22, %v2316_v3  ;;  %v3578_v9 = vpop.f32.mrb[100].mxu1 }
 0x1cb   : > { %v2276_v59 = vadd.f32 %v3578_v9, %v2179_v17  ;;  %v2267_v42 = vpop.f32.mrb[101].mxu1 }
 0x1cc   : > { %v2268_v11 = vadd.f32 %v2267_v42, %v2171_v1  ;;  %v3579_v44 = vpop.f32.mrb[102].mxu1  ;;  %3604 = vmatprep.mubr.bf16.mxu0 %v2364_v25 }
 0x1cd   : > { %v2279_v62 = vadd.f32 %v3579_v44, %v2182_v20  ;;  %v2270_v12 = vpop.f32.mrb[103].mxu1  ;;  %3605 = vmatmul.mubr.bf16.vlgmr.msra.gmra.mrb[32].mxu0 %v2367_v6  ;;  %v2334_v63 = vmax.f32 %v2276_v59, 0.0 }
 0x1ce   : > { %v2271_v49 = vadd.f32 %v2270_v12, %v5143_v5  ;;  %v2328_v19 = vmax.f32 %v2268_v11, 0.0 }
 0x1cf   : > { %v2337_v14 = vmax.f32 %v2279_v62, 0.0 }
 0x1d0   : > { %v2331_v15 = vmax.f32 %v2271_v49, 0.0 }
 0x1d1   : > { %v2373_v4 = vpack.c.bf16 %v2337_v14, %v2334_v63 }
 0x1d2   : > { %v2370_v7 = vpack.c.bf16 %v2331_v15, %v2328_v19  ;;  %v3582_v23 = vpop.f32.mrb[104].mxu1 }
 0x1d3   : > { %v2292_v24 = vadd.f32 %v3582_v23, %v2195_v51  ;;  %v2283_v26 = vpop.f32.mrb[105].mxu1 }
 0x1d4   : > { %v2284_v29 = vadd.f32 %v2283_v26, %v2187_v34  ;;  %v3583_v17 = vpop.f32.mrb[106].mxu1  ;;  %3608 = vmatprep.mubr.bf16.mxu0 %v2370_v7  ;;  %v656_v34 = vsub.s32 1, %v4983_v41 }
 0x1d5   : > { %v2295_v1 = vadd.f32 %v3583_v17, %v2198_v56  ;;  %v2286_v27 = vpop.f32.mrb[107].mxu1  ;;  %3609 = vmatmul.mubr.bf16.gmra.mrb[36].mxu0 %v2373_v4  ;;  %v2346_v28 = vmax.f32 %v2292_v24, 0.0 }
 0x1d6   : > { %v2287_v20 = vadd.f32 %v2286_v27, %v5149_v36  ;;  %v2340_v5 = vmax.f32 %v2284_v29, 0.0  ;;  %v5169_v50 = vrot.slane %v4997_v46, %v656_v34 }
 0x1d7   : > { %v2349_v30 = vmax.f32 %v2295_v1, 0.0 }
 0x1d8   : > { %v2343_v31 = vmax.f32 %v2287_v20, 0.0 }
 0x1d9   : > { %v2379_v10 = vpack.c.bf16 %v2349_v30, %v2346_v28 }
 0x1da   : > { %v2376_v35 = vpack.c.bf16 %v2343_v31, %v2340_v5  ;;  %v3586_v13 = vpop.f32.mrb[108].mxu1 }
 0x1db   : > { %v2308_v37 = vadd.f32 %v3586_v13, %v2211_v18  ;;  %v2299_v51 = vpop.f32.mrb[109].mxu1 }
 0x1dc   : > { %v2300_v39 = vadd.f32 %v2299_v51, %v2203_v0  ;;  %v3587_v40 = vpop.f32.mrb[110].mxu1  ;;  %3612 = vmatprep.mubr.bf16.mxu0 %v2376_v35 }
 0x1dd   : > { %v2311_v56 = vadd.f32 %v3587_v40, %v2214_v21  ;;  %v2302_v43 = vpop.f32.mrb[111].mxu1  ;;  %3613 = vmatmul.mubr.bf16.gmra.mrb[40].mxu0 %v2379_v10  ;;  %v2358_v47 = vmax.f32 %v2308_v37, 0.0 }
 0x1de   : > { %v2303_v36 = vadd.f32 %v2302_v43, %v5155_v8  ;;  %v2352_v16 = vmax.f32 %v2300_v39, 0.0 }
 0x1df   : > { %v2361_v48 = vmax.f32 %v2311_v56, 0.0 }
 0x1e0   : > { %v2355_v53 = vmax.f32 %v2303_v36, 0.0 }
 0x1e1   : > { %v2385_v18 = vpack.c.bf16 %v2361_v48, %v2358_v47  ;;  %v1847_v41 = vpop.f32.mrb[0].mxu0 }
 0x1e2   : > { %v2382_v0 = vpack.c.bf16 %v2355_v53, %v2352_v16  ;;  %v3652_v52 = vadd.f32 %v1847_v41, %v5166_v45  ;;  %v1849_v21 = vpop.f32.mrb[1].mxu0 }
 0x1e3   : > { %v3653_v54 = vadd.f32 %v1849_v21, %v5169_v50  ;;  %v1851_v57 = vpop.f32.mrb[2].mxu0 }
 0x1e4   : > { %v3654_v8 = vadd.f32 %v1851_v57, %v5166_v45  ;;  %3616 = vmatprep.mubr.bf16.mxu0 %v2382_v0  ;;  %v1853_v58 = vpop.f32.mrb[3].mxu0  ;;  %v2314_v46 = vmax.f32 %v3652_v52, 0.0 }
 0x1e5   : > { %v3655_v55 = vadd.f32 %v1853_v58, %v5169_v50  ;;  %3617 = vmatmul.mubr.bf16.gmra.mrb[44].mxu0 %v2385_v18  ;;  %v2315_v32 = vmax.f32 %v3653_v54, 0.0 }
 0x1e6   : > { %v2317_v60 = vmax.f32 %v3654_v8, 0.0 }
 0x1e7   : > { %v2318_v33 = vmax.f32 %v3655_v55, 0.0 }
 0x1e8   : > { %v2362_v2 = vpack.c.bf16 %v2317_v60, %v2314_v46 }
 0x1e9   : > { %v2363_v61 = vpack.c.bf16 %v2318_v33, %v2315_v32  ;;  %v1857_v3 = vpop.f32.mrb[4].mxu0 }
 0x1ea   : > { %v3656_v22 = vadd.f32 %v1857_v3, %v5166_v45  ;;  %v1859_v6 = vpop.f32.mrb[5].mxu0 }
 0x1eb   : > { %v3657_v25 = vadd.f32 %v1859_v6, %v5169_v50  ;;  %v1861_v9 = vpop.f32.mrb[6].mxu0  ;;  %2617 = vmatprep.mubr.bf16.mxu1 %v2363_v61 }
 0x1ec   : > { %v3658_v59 = vadd.f32 %v1861_v9, %v5166_v45  ;;  %v1863_v42 = vpop.f32.mrb[7].mxu0  ;;  %2618 = vmatmul.mubr.bf16.vlgmr.msra.gmra.mrb[112].mxu1 %v2362_v2  ;;  %v2320_v44 = vmax.f32 %v3656_v22, 0.0 }
 0x1ed   : > { %v3659_v11 = vadd.f32 %v1863_v42, %v5169_v50  ;;  %v2321_v12 = vmax.f32 %v3657_v25, 0.0 }
 0x1ee   : > { %v2323_v62 = vmax.f32 %v3658_v59, 0.0 }
 0x1ef   : > { %v2324_v49 = vmax.f32 %v3659_v11, 0.0 }
 0x1f0   : > { %v2365_v63 = vpack.c.bf16 %v2323_v62, %v2320_v44 }
 0x1f1   : > { %v2366_v14 = vpack.c.bf16 %v2324_v49, %v2321_v12  ;;  %v1867_v19 = vpop.f32.mrb[8].mxu0 }
 0x1f2   : > { %v3660_v15 = vadd.f32 %v1867_v19, %v5166_v45  ;;  %v1869_v4 = vpop.f32.mrb[9].mxu0 }
 0x1f3   : > { %v3661_v7 = vadd.f32 %v1869_v4, %v5169_v50  ;;  %v1871_v23 = vpop.f32.mrb[10].mxu0  ;;  %2625 = vmatprep.mubr.bf16.mxu1 %v2366_v14 }
 0x1f4   : > { %v3662_v24 = vadd.f32 %v1871_v23, %v5166_v45  ;;  %v1873_v26 = vpop.f32.mrb[11].mxu0  ;;  %2626 = vmatmul.mubr.bf16.gmra.mrb[116].mxu1 %v2365_v63  ;;  %v2326_v17 = vmax.f32 %v3660_v15, 0.0 }
 0x1f5   : > { %v3663_v29 = vadd.f32 %v1873_v26, %v5169_v50  ;;  %v2327_v27 = vmax.f32 %v3661_v7, 0.0 }
 0x1f6   : > { %v2329_v1 = vmax.f32 %v3662_v24, 0.0 }
 0x1f7   : > { %v2330_v20 = vmax.f32 %v3663_v29, 0.0 }
 0x1f8   : > { %v2368_v28 = vpack.c.bf16 %v2329_v1, %v2326_v17 }
 0x1f9   : > { %v2369_v30 = vpack.c.bf16 %v2330_v20, %v2327_v27  ;;  %v1877_v5 = vpop.f32.mrb[12].mxu0 }
 0x1fa   : > { %v3664_v31 = vadd.f32 %v1877_v5, %v5166_v45  ;;  %v1879_v10 = vpop.f32.mrb[13].mxu0 }
 0x1fb   : > { %v3665_v35 = vadd.f32 %v1879_v10, %v5169_v50  ;;  %v1881_v13 = vpop.f32.mrb[14].mxu0  ;;  %2633 = vmatprep.mubr.bf16.mxu1 %v2369_v30 }
 0x1fc   : > { %v3666_v38 = vadd.f32 %v1881_v13, %v5166_v45  ;;  %v1883_v37 = vpop.f32.mrb[15].mxu0  ;;  %2634 = vmatmul.mubr.bf16.gmra.mrb[120].mxu1 %v2368_v28  ;;  %v2332_v34 = vmax.f32 %v3664_v31, 0.0 }
 0x1fd   : > { %v3667_v51 = vadd.f32 %v1883_v37, %v5169_v50  ;;  %v2333_v40 = vmax.f32 %v3665_v35, 0.0 }
 0x1fe   : > { %v2335_v39 = vmax.f32 %v3666_v38, 0.0 }
 0x1ff   : > { %v2336_v56 = vmax.f32 %v3667_v51, 0.0 }
 0x200   : > { %v2371_v43 = vpack.c.bf16 %v2335_v39, %v2332_v34  ;;  %v4043_v34 = vld [vmem:[%s5353_s5] sm:$0xff]   ;;  %v4046_v39 = vld [vmem:[%s5353_s5 + $0x18] sm:$0xff]  }
 0x201   : > { %v2372_v36 = vpack.c.bf16 %v2336_v56, %v2333_v40  ;;  %v1887_v47 = vpop.f32.mrb[16].mxu0  ;;  %3620 = vmatprep.subr.bf16.mxu1 %v4043_v34  ;;  %v4047_v40 = vld [vmem:[%s5353_s5 + $0x20] sm:$0xff]   ;;  %v4048_v56 = vld [vmem:[%s5353_s5 + $0x28] sm:$0xff]  }
 0x202   : > { %v3668_v48 = vadd.f32 %v1887_v47, %v5166_v45  ;;  %v1889_v16 = vpop.f32.mrb[17].mxu0  ;;  %3621 = vmatpush3.bf16.msra.mxu1 %v4043_v34 }
 0x203   : > { %v3669_v53 = vadd.f32 %v1889_v16, %v5169_v50  ;;  %v1891_v18 = vpop.f32.mrb[18].mxu0  ;;  %2641 = vmatprep.mubr.bf16.mxu1 %v2372_v36  ;;  %v4050_v36 = vld [vmem:[%s5353_s5 + $0x38] sm:$0xff]  }
 0x204   : > { %v3670_v41 = vadd.f32 %v1891_v18, %v5166_v45  ;;  %v1893_v0 = vpop.f32.mrb[19].mxu0  ;;  %2642 = vmatmul.mubr.bf16.gmra.mrb[124].mxu1 %v2371_v43  ;;  %v2338_v21 = vmax.f32 %v3668_v48, 0.0  ;;  %v4049_v43 = vld [vmem:[%s5353_s5 + $0x30] sm:$0xff]  }
 0x205   : > { %v3671_v52 = vadd.f32 %v1893_v0, %v5169_v50  ;;  %v2339_v57 = vmax.f32 %v3669_v53, 0.0 }
 0x206   : > { %v2341_v54 = vmax.f32 %v3670_v41, 0.0 }
 0x207   : > { %v2342_v8 = vmax.f32 %v3671_v52, 0.0 }
 0x208   : > { %v2374_v58 = vpack.c.bf16 %v2341_v54, %v2338_v21 }
 0x209   : > { %v2375_v55 = vpack.c.bf16 %v2342_v8, %v2339_v57  ;;  %v1897_v46 = vpop.f32.mrb[20].mxu0 }
 0x20a   : > { %v3672_v60 = vadd.f32 %v1897_v46, %v5166_v45  ;;  %v1899_v32 = vpop.f32.mrb[21].mxu0 }
 0x20b   : > { %v3673_v33 = vadd.f32 %v1899_v32, %v5169_v50  ;;  %v1901_v2 = vpop.f32.mrb[22].mxu0  ;;  %2649 = vmatprep.mubr.bf16.mxu1 %v2375_v55 }
 0x20c   : > { %v3674_v61 = vadd.f32 %v1901_v2, %v5166_v45  ;;  %v1903_v3 = vpop.f32.mrb[23].mxu0  ;;  %2650 = vmatmul.mubr.bf16.gmra.mrb[128].mxu1 %v2374_v58  ;;  %v2344_v6 = vmax.f32 %v3672_v60, 0.0 }
 0x20d   : > { %v3675_v22 = vadd.f32 %v1903_v3, %v5169_v50  ;;  %v2345_v9 = vmax.f32 %v3673_v33, 0.0  ;;  %v5246_v33 = vld [vmem:[%s5352_s4] ss:$0 sm:$0xff] }
 0x20e   : > { %v2347_v25 = vmax.f32 %v3674_v61, 0.0 }
 0x20f   : > { %v2348_v59 = vmax.f32 %v3675_v22, 0.0 }
 0x210   : > { %v2377_v42 = vpack.c.bf16 %v2347_v25, %v2344_v6 }
 0x211   : > { %v2378_v11 = vpack.c.bf16 %v2348_v59, %v2345_v9  ;;  %v1907_v44 = vpop.f32.mrb[24].mxu0 }
 0x212   : > { %v3676_v62 = vadd.f32 %v1907_v44, %v5166_v45  ;;  %v1909_v12 = vpop.f32.mrb[25].mxu0 }
 0x213   : > { %v3677_v49 = vadd.f32 %v1909_v12, %v5169_v50  ;;  %v1911_v63 = vpop.f32.mrb[26].mxu0  ;;  %2657 = vmatprep.mubr.bf16.mxu1 %v2378_v11 }
 0x214   : > { %v3678_v14 = vadd.f32 %v1911_v63, %v5166_v45  ;;  %v1913_v19 = vpop.f32.mrb[27].mxu0  ;;  %2658 = vmatmul.mubr.bf16.gmra.mrb[132].mxu1 %v2377_v42  ;;  %v2350_v4 = vmax.f32 %v3676_v62, 0.0 }
 0x215   : > { %v3679_v15 = vadd.f32 %v1913_v19, %v5169_v50  ;;  %v2351_v23 = vmax.f32 %v3677_v49, 0.0 }
 0x216   : > { %v2353_v7 = vmax.f32 %v3678_v14, 0.0 }
 0x217   : > { %v2354_v24 = vmax.f32 %v3679_v15, 0.0 }
 0x218   : > { %v2380_v26 = vpack.c.bf16 %v2353_v7, %v2350_v4 }
 0x219   : > { %v2381_v29 = vpack.c.bf16 %v2354_v24, %v2351_v23  ;;  %v1917_v17 = vpop.f32.mrb[28].mxu0 }
 0x21a   : > { %v3680_v1 = vadd.f32 %v1917_v17, %v5166_v45  ;;  %v1919_v27 = vpop.f32.mrb[29].mxu0 }
 0x21b   : > { %v3681_v20 = vadd.f32 %v1919_v27, %v5169_v50  ;;  %v1921_v28 = vpop.f32.mrb[30].mxu0  ;;  %2665 = vmatprep.mubr.bf16.mxu1 %v2381_v29 }
 0x21c   : > { %v3682_v30 = vadd.f32 %v1921_v28, %v5166_v45  ;;  %v1923_v5 = vpop.f32.mrb[31].mxu0  ;;  %2666 = vmatmul.mubr.bf16.gmra.mrb[136].mxu1 %v2380_v26  ;;  %v2356_v10 = vmax.f32 %v3680_v1, 0.0  ;;  %v4044_v45 = vld [vmem:[%s5353_s5 + $0x8] sm:$0xff]  }
 0x21d   : > { %v3683_v31 = vadd.f32 %v1923_v5, %v5169_v50  ;;  %v2357_v13 = vmax.f32 %v3681_v20, 0.0  ;;  %3622 = vmatprep.subr.bf16.mxu1 %v4044_v45  ;;  %v4045_v50 = vld [vmem:[%s5353_s5 + $0x10] sm:$0xff]  }
 0x21e   : > { %v2359_v35 = vmax.f32 %v3682_v30, 0.0  ;;  %3623 = vmatpush3.bf16.msra.mxu1 %v4044_v45 }
 0x21f   : > { %v2360_v38 = vmax.f32 %v3683_v31, 0.0  ;;  %3624 = vmatprep.subr.bf16.mxu1 %v4045_v50 }
 0x220   : > { %v2383_v37 = vpack.c.bf16 %v2359_v35, %v2356_v10 }
 0x221   : > { %v2384_v51 = vpack.c.bf16 %v2360_v38, %v2357_v13 }
 0x222   : > { %3625 = vmatpush3.bf16.msra.mxu1 %v4045_v50 }
 0x223   : > { %2673 = vmatprep.mubr.bf16.mxu1 %v2384_v51  ;;  %3626 = vmatprep.subr.bf16.mxu1 %v4046_v39 }
 0x224   : > { %2674 = vmatmul.mubr.bf16.gmra.mrb[140].mxu1 %v2383_v37 }
 0x226   : > { %3627 = vmatpush3.bf16.msra.mxu1 %v4046_v39 }
 0x227   : > { %3628 = vmatprep.subr.bf16.mxu1 %v4047_v40 }
 0x22a   : > { %3629 = vmatpush3.bf16.msra.mxu1 %v4047_v40 }
 0x22b   : > { %3630 = vmatprep.subr.bf16.mxu1 %v4048_v56 }
 0x22e   : > { %3631 = vmatpush3.bf16.msra.mxu1 %v4048_v56 }
 0x22f   : > { %3632 = vmatprep.subr.bf16.mxu1 %v4049_v43 }
 0x232   : > { %3633 = vmatpush3.bf16.msra.mxu1 %v4049_v43 }
 0x233   : > { %3634 = vmatprep.subr.bf16.mxu1 %v4050_v36 }
 0x236   : > { %3635 = vmatpush3.bf16.msra.mxu1 %v4050_v36 }
 0x2a0   : > { %v3606_v47 = vpop.f32.mrb[32].mxu0 }
 0x2a1   : > { %v2716_v48 = vpop.f32.mrb[33].mxu0 }
 0x2a2   : > { %v3607_v16 = vpop.f32.mrb[34].mxu0 }
 0x2a3   : > { %v2719_v53 = vpop.f32.mrb[35].mxu0 }
 0x2a8   : > { %v3610_v18 = vpop.f32.mrb[36].mxu0 }
 0x2a9   : > { %v2732_v41 = vpop.f32.mrb[37].mxu0 }
 0x2aa   : > { %v3611_v0 = vpop.f32.mrb[38].mxu0 }
 0x2ab   : > { %v2735_v52 = vpop.f32.mrb[39].mxu0 }
 0x2b0   : > { %v5227_v21 = vpop.f32.mrb[40].mxu0 }
 0x2b1   : > { %v5229_v54 = vpop.f32.mrb[41].mxu0 }
 0x2b2   : > { %v5231_v57 = vpop.f32.mrb[42].mxu0 }
 0x2b3   : > { %v5233_v8 = vpop.f32.mrb[43].mxu0 }
 0x2b8   : > { %v5235_v58 = vpop.f32.mrb[44].mxu0 }
 0x2b9   : > { %v5237_v55 = vpop.f32.mrb[45].mxu0 }
 0x2ba   : > { %v5239_v46 = vpop.f32.mrb[46].mxu0 }
 0x2bb   : > { %v5241_v60 = vpop.f32.mrb[47].mxu0 }
 0x2bf   : > { %v3490_v32 = vpop.f32.mrb[112].mxu1 }
 0x2c0   : > { %v3491_v2 = vpop.f32.mrb[113].mxu1 }
 0x2c1   : > { %v3492_v61 = vadd.f32 %v3491_v2, %v3490_v32  ;;  %v3493_v3 = vpop.f32.mrb[114].mxu1 }
 0x2c2   : > { %v3494_v22 = vpop.f32.mrb[115].mxu1 }
 0x2c3   : > { %v2620_v6 = vadd.f32 %v3492_v61, %v5246_v33  ;;  %v3495_v25 = vadd.f32 %v3494_v22, %v3493_v3 }
 0x2c5   : > { %v2717_v9 = vadd.f32 %v2716_v48, %v2620_v6  ;;  %v2623_v59 = vadd.f32 %v3495_v25, %v5246_v33 }
 0x2c7   : > { %v2720_v42 = vadd.f32 %v2719_v53, %v2623_v59  ;;  %v3496_v11 = vpop.f32.mrb[116].mxu1  ;;  %v2779_v62 = vmax.f32 %v2717_v9, 0.0 }
 0x2c8   : > { %v3497_v44 = vpop.f32.mrb[117].mxu1 }
 0x2c9   : > { %v2780_v12 = vmax.f32 %v2720_v42, 0.0  ;;  %v3498_v49 = vadd.f32 %v3497_v44, %v3496_v11  ;;  %v3499_v63 = vpop.f32.mrb[118].mxu1 }
 0x2ca   : > { %v3500_v14 = vpop.f32.mrb[119].mxu1 }
 0x2cb   : > { %v2628_v19 = vadd.f32 %v3498_v49, %v5246_v33  ;;  %v3501_v15 = vadd.f32 %v3500_v14, %v3499_v63  ;;  %v2795_v4 = vpack.c.bf16 %v2780_v12, %v2779_v62 }
 0x2cd   : > { %v2725_v7 = vadd.f32 %v3606_v47, %v2628_v19  ;;  %v2631_v23 = vadd.f32 %v3501_v15, %v5246_v33  ;;  %3636 = vmatprep.mubr.bf16.mxu1 %v2795_v4 }
 0x2cf   : > { %v2728_v24 = vadd.f32 %v3607_v16, %v2631_v23  ;;  %v3502_v26 = vpop.f32.mrb[120].mxu1  ;;  %v2781_v17 = vmax.f32 %v2725_v7, 0.0 }
 0x2d0   : > { %v3503_v29 = vpop.f32.mrb[121].mxu1 }
 0x2d1   : > { %v2782_v1 = vmax.f32 %v2728_v24, 0.0  ;;  %v3504_v27 = vadd.f32 %v3503_v29, %v3502_v26  ;;  %v3505_v20 = vpop.f32.mrb[122].mxu1 }
 0x2d2   : > { %v3506_v28 = vpop.f32.mrb[123].mxu1 }
 0x2d3   : > { %v2796_v30 = vpack.c.bf16 %v2782_v1, %v2781_v17  ;;  %v2636_v5 = vadd.f32 %v3504_v27, %v5246_v33  ;;  %v3507_v31 = vadd.f32 %v3506_v28, %v3505_v20 }
 0x2d5   : > { %v2733_v10 = vadd.f32 %v2732_v41, %v2636_v5  ;;  %v2639_v35 = vadd.f32 %v3507_v31, %v5246_v33  ;;  %3637 = vmatmul.mubr.bf16.vlgmr.msra.gmra.mrb[144].mxu1 %v2796_v30 }
 0x2d7   : > { %v2736_v13 = vadd.f32 %v2735_v52, %v2639_v35  ;;  %v3508_v38 = vpop.f32.mrb[124].mxu1  ;;  %v2783_v51 = vmax.f32 %v2733_v10, 0.0 }
 0x2d8   : > { %v3509_v37 = vpop.f32.mrb[125].mxu1 }
 0x2d9   : > { %v2784_v34 = vmax.f32 %v2736_v13, 0.0  ;;  %v3510_v45 = vadd.f32 %v3509_v37, %v3508_v38  ;;  %v3511_v50 = vpop.f32.mrb[126].mxu1 }
 0x2da   : > { %v3512_v39 = vpop.f32.mrb[127].mxu1 }
 0x2db   : > { %v2644_v40 = vadd.f32 %v3510_v45, %v5246_v33  ;;  %v3513_v56 = vadd.f32 %v3512_v39, %v3511_v50  ;;  %v2797_v43 = vpack.c.bf16 %v2784_v34, %v2783_v51 }
 0x2dd   : > { %v2741_v36 = vadd.f32 %v3610_v18, %v2644_v40  ;;  %v2647_v47 = vadd.f32 %v3513_v56, %v5246_v33  ;;  %3640 = vmatprep.mubr.bf16.mxu1 %v2797_v43  ;;  %v3258_v40 = vld [vmem:[%s5354_s6] ss:$0 sm:$0xff] }
 0x2df   : > { %v2744_v48 = vadd.f32 %v3611_v0, %v2647_v47  ;;  %v3514_v16 = vpop.f32.mrb[128].mxu1  ;;  %v2785_v41 = vmax.f32 %v2741_v36, 0.0 }
 0x2e0   : > { %v3515_v53 = vpop.f32.mrb[129].mxu1 }
 0x2e1   : > { %v2786_v52 = vmax.f32 %v2744_v48, 0.0  ;;  %v3516_v32 = vadd.f32 %v3515_v53, %v3514_v16  ;;  %v3517_v2 = vpop.f32.mrb[130].mxu1 }
 0x2e2   : > { %v3518_v61 = vpop.f32.mrb[131].mxu1 }
 0x2e3   : > { %v2652_v3 = vadd.f32 %v3516_v32, %v5246_v33  ;;  %v3519_v22 = vadd.f32 %v3518_v61, %v3517_v2  ;;  %v2798_v6 = vpack.c.bf16 %v2786_v52, %v2785_v41 }
 0x2e5   : > { %v2749_v25 = vadd.f32 %v5229_v54, %v2652_v3  ;;  %v2655_v9 = vadd.f32 %v3519_v22, %v5246_v33  ;;  %3641 = vmatmul.mubr.bf16.gmra.mrb[148].mxu1 %v2798_v6 }
 0x2e7   : > { %v2752_v18 = vadd.f32 %v5233_v8, %v2655_v9  ;;  %v3520_v59 = vpop.f32.mrb[132].mxu1  ;;  %v2787_v42 = vmax.f32 %v2749_v25, 0.0 }
 0x2e8   : > { %v3521_v0 = vpop.f32.mrb[133].mxu1 }
 0x2e9   : > { %v2788_v11 = vmax.f32 %v2752_v18, 0.0  ;;  %v3522_v44 = vadd.f32 %v3521_v0, %v3520_v59  ;;  %v3523_v62 = vpop.f32.mrb[134].mxu1 }
 0x2ea   : > { %v3524_v12 = vpop.f32.mrb[135].mxu1 }
 0x2eb   : > { %v2660_v49 = vadd.f32 %v3522_v44, %v5246_v33  ;;  %v3525_v63 = vadd.f32 %v3524_v12, %v3523_v62  ;;  %v2799_v14 = vpack.c.bf16 %v2788_v11, %v2787_v42 }
 0x2ed   : > { %v2757_v19 = vadd.f32 %v5227_v21, %v2660_v49  ;;  %v2663_v54 = vadd.f32 %v3525_v63, %v5246_v33  ;;  %3644 = vmatprep.mubr.bf16.mxu1 %v2799_v14 }
 0x2ef   : > { %v2760_v15 = vadd.f32 %v5231_v57, %v2663_v54  ;;  %v3526_v4 = vpop.f32.mrb[136].mxu1  ;;  %v2789_v7 = vmax.f32 %v2757_v19, 0.0 }
 0x2f0   : > { %v3527_v8 = vpop.f32.mrb[137].mxu1 }
 0x2f1   : > { %v2790_v23 = vmax.f32 %v2760_v15, 0.0  ;;  %v3528_v24 = vadd.f32 %v3527_v8, %v3526_v4  ;;  %v3529_v26 = vpop.f32.mrb[138].mxu1 }
 0x2f2   : > { %v3530_v29 = vpop.f32.mrb[139].mxu1 }
 0x2f3   : > { %v2668_v17 = vadd.f32 %v3528_v24, %v5246_v33  ;;  %v3531_v1 = vadd.f32 %v3530_v29, %v3529_v26  ;;  %v2800_v27 = vpack.c.bf16 %v2790_v23, %v2789_v7 }
 0x2f5   : > { %v2765_v20 = vadd.f32 %v5237_v55, %v2668_v17  ;;  %v2671_v21 = vadd.f32 %v3531_v1, %v5246_v33  ;;  %3645 = vmatmul.mubr.bf16.gmra.mrb[152].mxu1 %v2800_v27 }
 0x2f7   : > { %v2768_v28 = vadd.f32 %v5241_v60, %v2671_v21  ;;  %v3532_v30 = vpop.f32.mrb[140].mxu1  ;;  %v2791_v5 = vmax.f32 %v2765_v20, 0.0 }
 0x2f8   : > { %v3533_v57 = vpop.f32.mrb[141].mxu1 }
 0x2f9   : > { %v2792_v31 = vmax.f32 %v2768_v28, 0.0  ;;  %v3534_v10 = vadd.f32 %v3533_v57, %v3532_v30  ;;  %v3535_v35 = vpop.f32.mrb[142].mxu1 }
 0x2fa   : > { %v3536_v13 = vpop.f32.mrb[143].mxu1 }
 0x2fb   : > { %v2676_v38 = vadd.f32 %v3534_v10, %v5246_v33  ;;  %v3537_v37 = vadd.f32 %v3536_v13, %v3535_v35  ;;  %v2801_v51 = vpack.c.bf16 %v2792_v31, %v2791_v5 }
 0x2fd   : > { %v2773_v55 = vadd.f32 %v5235_v58, %v2676_v38  ;;  %v2679_v34 = vadd.f32 %v3537_v37, %v5246_v33  ;;  %3648 = vmatprep.mubr.bf16.mxu1 %v2801_v51 }
 0x2ff   : > { %v2776_v60 = vadd.f32 %v5239_v46, %v2679_v34  ;;  %v2793_v45 = vmax.f32 %v2773_v55, 0.0 }
 0x301   : > { %v2794_v50 = vmax.f32 %v2776_v60, 0.0 }
 0x303   : > { %v2802_v39 = vpack.c.bf16 %v2794_v50, %v2793_v45 }
 0x305   : > { %3649 = vmatmul.mubr.bf16.gmra.mrb[156].mxu1 %v2802_v39 }
 0x3a8   : > { %v3638_v56 = vpop.f32.mrb[144].mxu1 }
 0x3a9   : > { %v2917_v43 = vadd.f32 %v3638_v56, %v3258_v40  ;;  %v2908_v36 = vpop.f32.mrb[145].mxu1 }
 0x3aa   : > { %v2909_v58 = vadd.f32 %v3258_v40, %v2908_v36  ;;  %v3639_v47 = vpop.f32.mrb[146].mxu1 }
 0x3ab   : > { %2973 = vst [vmem:[%s5278_s14 + $0x10] sm:$0xff] %v2917_v43  ;;  %v2920_v46 = vadd.f32 %v3639_v47, %v3258_v40  ;;  %v2911_v33 = vpop.f32.mrb[147].mxu1 }
 0x3ac   : > { %2971 = vst [vmem:[%s5278_s14] sm:$0xff] %v2909_v58  ;;  %v2912_v48 = vadd.f32 %v3258_v40, %v2911_v33 }
 0x3ad   : > { %2974 = vst [vmem:[%s5278_s14 + $0x18] sm:$0xff] %v2920_v46 }
 0x3ae   : > { %2972 = vst [vmem:[%s5278_s14 + $0x8] sm:$0xff] %v2912_v48 }
 0x3b8   : > { %v3642_v16 = vpop.f32.mrb[148].mxu1 }
 0x3b9   : > { %v2933_v53 = vadd.f32 %v3642_v16, %v3258_v40  ;;  %v2924_v41 = vpop.f32.mrb[149].mxu1 }
 0x3ba   : > { %v2925_v52 = vadd.f32 %v3258_v40, %v2924_v41  ;;  %v3643_v32 = vpop.f32.mrb[150].mxu1 }
 0x3bb   : > { %2977 = vst [vmem:[%s5278_s14 + $0x30] sm:$0xff] %v2933_v53  ;;  %v2936_v2 = vadd.f32 %v3643_v32, %v3258_v40  ;;  %v2927_v61 = vpop.f32.mrb[151].mxu1 }
 0x3bc   : > { %2975 = vst [vmem:[%s5278_s14 + $0x20] sm:$0xff] %v2925_v52  ;;  %v2928_v3 = vadd.f32 %v3258_v40, %v2927_v61 }
 0x3bd   : > { %2978 = vst [vmem:[%s5278_s14 + $0x38] sm:$0xff] %v2936_v2 }
 0x3be   : > { %2976 = vst [vmem:[%s5278_s14 + $0x28] sm:$0xff] %v2928_v3 }
 0x3c8   : > { %v3646_v22 = vpop.f32.mrb[152].mxu1 }
 0x3c9   : > { %v2949_v6 = vadd.f32 %v3646_v22, %v3258_v40  ;;  %v2940_v25 = vpop.f32.mrb[153].mxu1 }
 0x3ca   : > { %v2941_v9 = vadd.f32 %v3258_v40, %v2940_v25  ;;  %v3647_v18 = vpop.f32.mrb[154].mxu1 }
 0x3cb   : > { %2981 = vst [vmem:[%s5278_s14 + $0x50] sm:$0xff] %v2949_v6  ;;  %v2952_v59 = vadd.f32 %v3647_v18, %v3258_v40  ;;  %v2943_v0 = vpop.f32.mrb[155].mxu1 }
 0x3cc   : > { %2979 = vst [vmem:[%s5278_s14 + $0x40] sm:$0xff] %v2941_v9  ;;  %v2944_v42 = vadd.f32 %v3258_v40, %v2943_v0 }
 0x3cd   : > { %2982 = vst [vmem:[%s5278_s14 + $0x58] sm:$0xff] %v2952_v59 }
 0x3ce   : > { %2980 = vst [vmem:[%s5278_s14 + $0x48] sm:$0xff] %v2944_v42 }
 0x3d8   : > { %v3650_v11 = vpop.f32.mrb[156].mxu1 }
 0x3d9   : > { %v2965_v44 = vadd.f32 %v3650_v11, %v3258_v40  ;;  %v2956_v62 = vpop.f32.mrb[157].mxu1 }
 0x3da   : > { %v2957_v12 = vadd.f32 %v3258_v40, %v2956_v62  ;;  %v3651_v49 = vpop.f32.mrb[158].mxu1 }
 0x3db   : > { %2985 = vst [vmem:[%s5278_s14 + $0x70] sm:$0xff] %v2965_v44  ;;  %v2968_v63 = vadd.f32 %v3651_v49, %v3258_v40  ;;  %v2959_v14 = vpop.f32.mrb[159].mxu1 }
 0x3dc   : > { %2983 = vst [vmem:[%s5278_s14 + $0x60] sm:$0xff] %v2957_v12  ;;  %v2960_v19 = vadd.f32 %v3258_v40, %v2959_v14 }
 0x3dd   : > { %2986 = vst [vmem:[%s5278_s14 + $0x78] sm:$0xff] %v2968_v63 }
 0x3de   : > { %2984 = vst [vmem:[%s5278_s14 + $0x68] sm:$0xff] %v2960_v19 }
 0x3df   : > { %4064 = shalt.err (!%p4061_p3)
}
 0x3e0   : > { %s4065_s9 = scalar_lea.hbm %s5298_s17, 2048  ;;  %s4069_s20 = scalar_lea.hbm %s5355_s7, 4096 }
 0x3e1   : > { %p4066_p4 = scmp.ne.s32.totalorder %s5298_s17, %s4065_s9  ;;  %p4070_p9 = scmp.lt.u32.totalorder %s5298_s17, %s5355_s7 }
 0x3e2   : > { %p4071_p10 = scmp.lt.u32.totalorder %s4069_s20, %s4065_s9  ;;  %p4073_p12 = scmp.lt.u32.totalorder %s4065_s9, %s5298_s17 }
 0x3e3   : > { %p4067_p7 = pnand %p4066_p4, %p4197_p5 }
 0x3e4   : > { %p4072_p11 = por %p4071_p10, %p4070_p9 }
 0x3e5   : > { %p4068_p8 = pneg %p4067_p7 }
 0x3e6   : > { %p4074_p13 = por %p4073_p12, %p4072_p11 }
 0x3e8   : > { %p4075_p0 = pnand %p4074_p13, %p4068_p8 }
 0x3ea   : > { %4078 = shalt.err (!%p4075_p0)
}
 0x3eb   : > { %s4117_s18 = smov 128   ;;  %s4118_s16 = smov 8  }
 0x3ec   : > { %3781 = dma.vmem_to_hbm [thread:$0]  (%p4197_p5), %s5300_s21, 2048, %s5298_s17, %s5307_s28, %s4117_s18, %s4117_s18, %s4118_s16  }
 0x3ed PF: > { %p3787_p1 = scmp.ge.s32.totalorder %s4113_s27, 2  ;;  %s3016_s22 = sand.u32 1, %s4101_s24  }
 0x3ee   : > { %s3017_s23 = scalar_lea.sflag [#allocation3], %s3016_s22 }
 0x3ef   : > { %p3784_p2 = pnand %p3787_p1, %p4201_p6 }
 0x3f1   : > { %4096 = dma.done.wait (!%p3784_p2), %s3017_s23, 2048  }
 0x3f2   : > { %4098 = vsyncadd (!%p3784_p2), %s3017_s23, 4294965248  ;;  %p17_p3 = scmp.ge.s32.totalorder %s4184_s30, 4   ;;  %s5359_s24 = smov %s4105_s25 }
 0x3f3   : > { %s5360_s25 = smov %s4109_s26  ;;  %s5361_s26 = smov %s4195_s10 }
 0x3f4   : > { %s5362_s27 = smov %s4184_s30  ;;  %19 = sbr.rel (!%p17_p3) target bundleno = 3 (0x3), region = 83 }
 0x3fb   :  { %3022 = vsyncpa [#allocation3], 1 }
 0x3fc   :  { %3024 = vsyncpa [#allocation3 + $0x1], 1 }

</bundles_post_ra>
